<compile_context>
chip_gen: v7x
topology: tpu7x:2x2x1
jax: 0.10.0
libtpu: 0.0.40
codegen_flags: <defaults>
</compile_context>

<pallas_src>
import functools

import jax
import jax.numpy as jnp
from jax.experimental import pallas as pl
from jax.experimental.pallas import tpu as pltpu

HIDDEN = 32     # encoder.hidden_size == decoder.hidden_size
N_LAYERS = 1    # encoder.n_layers == decoder.n_layers
IN_FEAT = 1     # encoder input feature size
OUT_FEAT = 1    # decoder in/out feature size (decoder_input starts as [[0.]])
T_IN = 8        # observed sequence length
T_OUT = 8       # target sequence length
BATCH = 1       # torch.Tensor([[0]]) pins batch size to 1


def seq2seq_kernel(x_ref, wih_e_ref, whh_e_ref, b_e_ref,
                   wih_d_ref, whh_d_ref, b_d_ref,
                   wfc_ref, wfc_t_ref, bfc_ref,
                   out_ref):
    hidden = whh_e_ref.shape[0]
    t_in = x_ref.shape[0]
    t_out = out_ref.shape[1]

    # Load weights once; they stay vreg/VMEM resident across the unrolled loops.
    whh_e = whh_e_ref[...]            # [H, 4H]
    whh_d = whh_d_ref[...]            # [H, 4H]
    wih_d = wih_d_ref[...]            # [1, 4H]   (OUT_FEAT == 1)
    b_d = b_d_ref[...]                # [1, 4H]
    wfc = wfc_ref[...]                # [H, 1]    (FC weight, column form)
    wfc_t = wfc_t_ref[...]            # [1, H]    (FC weight, lane-dense row)
    bfc = bfc_ref[...]                # [1, 1]

    # Gate-activation constants, hoisted (JAX does not CSE broadcast_in_dim).
    # sigmoid(x) == 0.5*tanh(0.5*x)+0.5  -> one EUP tanh pass over all 4H lanes,
    # with tanh lanes (g gate) passed through unscaled.
    lane = jax.lax.broadcasted_iota(jnp.int32, (1, 4 * hidden), 1)
    is_g = (lane >= 2 * hidden) & (lane < 3 * hidden)
    pre = jnp.where(is_g, 1.0, 0.5).astype(jnp.float32)     # scale before tanh
    post_mul = pre                                           # same values after
    post_add = jnp.where(is_g, 0.0, 0.5).astype(jnp.float32)

    def apply_gates(gates, c):
        """gates: [1, 4H] pre-activations (order i, f, g, o) -> (h_new, c_new)."""
        act = jnp.tanh(gates * pre) * post_mul + post_add    # single EUP pass
        i = act[:, 0 * hidden:1 * hidden]
        f = act[:, 1 * hidden:2 * hidden]
        g = act[:, 2 * hidden:3 * hidden]
        o = act[:, 3 * hidden:4 * hidden]
        c_new = f * c + i * g
        h_new = o * jnp.tanh(c_new)
        return h_new, c_new

    # Encoder input projection hoisted out of the loop (IN_FEAT == 1):
    # [T_IN,1] * [1,4H] + [1,4H]  -> pure VPU broadcast, no per-step matmul.
    xproj = x_ref[...] * wih_e_ref[...] + b_e_ref[...]       # [T_IN, 4H]

    # Hidden/cell state initialised to zero (PyTorch nn.LSTM default),
    # carried in registers (no VMEM scratch).
    h = jnp.zeros((1, hidden), jnp.float32)
    c = jnp.zeros((1, hidden), jnp.float32)

    # ---- encoder: one MXU matmul (h @ whh_e) per step ----
    for t in range(t_in):
        gates = xproj[t:t + 1, :] + jnp.dot(
            h, whh_e, preferred_element_type=jnp.float32)
        h, c = apply_gates(gates, c)

    # ---- decoder: autoregressive, decoder_input starts at 0 ----
    # Fold output FC + input projection into the recurrence:
    #   inp_{t+1} = h_t @ wfc + bfc
    #   gates_{t+1} = inp_{t+1}*wih_d + b_d + h_t @ whh_d
    #               = h_t @ (whh_d + wfc@wih_d) + (b_d + bfc*wih_d)
    # so the per-step prediction is off the serial critical path.
    whh_fused = whh_d + wfc * wih_d           # [H,4H]  one-time VPU outer product
    b_fused = b_d + bfc * wih_d               # [1,4H]

    out_lane = jax.lax.broadcasted_iota(jnp.int32, (1, t_out), 1)
    out_vec = jnp.zeros((1, t_out), jnp.float32)

    for t in range(t_out):
        if t == 0:
            # decoder_input = [[0.]]  ->  input projection contributes only b_d.
            gates = b_d + jnp.dot(h, whh_d, preferred_element_type=jnp.float32)
        else:
            gates = b_fused + jnp.dot(h, whh_fused,
                                      preferred_element_type=jnp.float32)
        h, c = apply_gates(gates, c)
        # Output FC (N==1): VPU multiply + XLU lane reduce; feeds only out_vec,
        # not the next-step gates (those use whh_fused), so it overlaps freely.
        pred = jnp.sum(h * wfc_t, axis=1, keepdims=True) + bfc   # [1, 1]
        out_vec = jnp.where(out_lane == t, pred, out_vec)        # outputs[t]

    out_ref[...] = out_vec            # single lane-dense store


def seq2seq_forward(x, y, params, teacher_forcing_ratio=0.5):
    # TODO(synk): teacher_forcing_ratio is unused in the PyTorch forward (no
    # teacher forcing actually happens) -- kept only for signature parity.
    t_in, b, f_in = x.shape
    t_out, b2, f_out = y.shape
    assert b == 1 and b2 == 1, "decoder_input=[[0]] pins batch size to 1"
    x2 = x.reshape(t_in, f_in).astype(jnp.float32)
    wfc = params["wfc"].astype(jnp.float32)          # [HIDDEN, OUT_FEAT]
    wfc_t = wfc.T                                    # [OUT_FEAT, HIDDEN], lane-dense

    vmem = functools.partial(pl.BlockSpec, memory_space=pltpu.MemorySpace.VMEM)
    out_lane = pl.pallas_call(
        seq2seq_kernel,
        out_shape=jax.ShapeDtypeStruct((1, t_out), jnp.float32),
        in_specs=[vmem()] * 10,
        out_specs=vmem(),
    )(x2,
      params["wih_e"], params["whh_e"], params["b_e"],
      params["wih_d"], params["whh_d"], params["b_d"],
      wfc, wfc_t, params["bfc"])
    return out_lane.reshape(t_out, 1, f_out)


def _lstm_step_ref(x_t, h, c, wih, whh, b, hidden):
    gates = x_t @ wih + h @ whh + b
    i = jax.nn.sigmoid(gates[:, 0 * hidden:1 * hidden])
    f = jax.nn.sigmoid(gates[:, 1 * hidden:2 * hidden])
    g = jnp.tanh(gates[:, 2 * hidden:3 * hidden])
    o = jax.nn.sigmoid(gates[:, 3 * hidden:4 * hidden])
    c_new = f * c + i * g
    h_new = o * jnp.tanh(c_new)
    return h_new, c_new


def seq2seq_reference(x, y, params):
    """Pure-JAX reference with identical math (PyTorch LSTM semantics)."""
    h = jnp.zeros((1, HIDDEN), jnp.float32)
    c = jnp.zeros((1, HIDDEN), jnp.float32)
    for t in range(x.shape[0]):
        h, c = _lstm_step_ref(x[t].astype(jnp.float32), h, c,
                              params["wih_e"], params["whh_e"], params["b_e"],
                              HIDDEN)
    inp = jnp.zeros((1, OUT_FEAT), jnp.float32)
    outs = []
    for _ in range(y.shape[0]):
        h, c = _lstm_step_ref(inp, h, c,
                              params["wih_d"], params["whh_d"], params["b_d"],
                              HIDDEN)
        pred = h @ params["wfc"] + params["bfc"]
        outs.append(pred)
        inp = pred
    return jnp.stack(outs)                                # [T_OUT, 1, OUT_FEAT]


def init_params(key):
    ks = jax.random.split(key, 9)
    s = 0.1
    return {
        "wih_e": s * jax.random.normal(ks[0], (IN_FEAT, 4 * HIDDEN), jnp.float32),
        "whh_e": s * jax.random.normal(ks[1], (HIDDEN, 4 * HIDDEN), jnp.float32),
        "b_e":   s * jax.random.normal(ks[2], (1, 4 * HIDDEN), jnp.float32),
        "wih_d": s * jax.random.normal(ks[3], (OUT_FEAT, 4 * HIDDEN), jnp.float32),
        "whh_d": s * jax.random.normal(ks[4], (HIDDEN, 4 * HIDDEN), jnp.float32),
        "b_d":   s * jax.random.normal(ks[5], (1, 4 * HIDDEN), jnp.float32),
        "wfc":   s * jax.random.normal(ks[6], (HIDDEN, OUT_FEAT), jnp.float32),
        "bfc":   s * jax.random.normal(ks[7], (1, OUT_FEAT), jnp.float32),
    }


if __name__ == "__main__":
    key = jax.random.PRNGKey(0)
    kx, ky, kp = jax.random.split(key, 3)
    x = jax.random.normal(kx, (T_IN, BATCH, IN_FEAT), jnp.float32)
    y = jax.random.normal(ky, (T_OUT, BATCH, OUT_FEAT), jnp.float32)
    params = init_params(kp)

    out = seq2seq_forward(x, y, params)
    out = jax.block_until_ready(out)

    ref = seq2seq_reference(x, y, params)
    assert out.shape == y.shape, (out.shape, y.shape)
    err = float(jnp.max(jnp.abs(out - ref)))
    assert jnp.allclose(out, ref, atol=1e-4, rtol=1e-4), (err, out, ref)
    print("KERNEL_OK")
</pallas_src>

<mosaic_0001>
module attributes {stable_mosaic.version = 11 : i64} {
  func.func @seq2seq_kernel(%arg0: memref<8x1xf32, #tpu.memory_space<vmem>>, %arg1: memref<1x128xf32, #tpu.memory_space<vmem>>, %arg2: memref<32x128xf32, #tpu.memory_space<vmem>>, %arg3: memref<1x128xf32, #tpu.memory_space<vmem>>, %arg4: memref<1x128xf32, #tpu.memory_space<vmem>>, %arg5: memref<32x128xf32, #tpu.memory_space<vmem>>, %arg6: memref<1x128xf32, #tpu.memory_space<vmem>>, %arg7: memref<32x1xf32, #tpu.memory_space<vmem>>, %arg8: memref<1x32xf32, #tpu.memory_space<vmem>>, %arg9: memref<1x1xf32, #tpu.memory_space<vmem>>, %arg10: memref<1x8xf32, #tpu.memory_space<vmem>>) attributes {dimension_semantics = [], scalar_prefetch = 0 : i64, scratch_operands = 0 : i64, tpu.core_type = #tpu.core_type<tc>} {
    %c0 = arith.constant 0 : index
    %c0_0 = arith.constant 0 : index
    %0 = vector.load %arg2[%c0, %c0_0] : memref<32x128xf32, #tpu.memory_space<vmem>>, vector<32x128xf32>
    %c0_1 = arith.constant 0 : index
    %c0_2 = arith.constant 0 : index
    %1 = vector.load %arg5[%c0_1, %c0_2] : memref<32x128xf32, #tpu.memory_space<vmem>>, vector<32x128xf32>
    %c0_3 = arith.constant 0 : index
    %c0_4 = arith.constant 0 : index
    %2 = vector.load %arg4[%c0_3, %c0_4] : memref<1x128xf32, #tpu.memory_space<vmem>>, vector<1x128xf32>
    %c0_5 = arith.constant 0 : index
    %c0_6 = arith.constant 0 : index
    %3 = vector.load %arg6[%c0_5, %c0_6] : memref<1x128xf32, #tpu.memory_space<vmem>>, vector<1x128xf32>
    %c0_7 = arith.constant 0 : index
    %c0_8 = arith.constant 0 : index
    %4 = vector.load %arg7[%c0_7, %c0_8] : memref<32x1xf32, #tpu.memory_space<vmem>>, vector<32x1xf32>
    %c0_9 = arith.constant 0 : index
    %c0_10 = arith.constant 0 : index
    %5 = vector.load %arg8[%c0_9, %c0_10] : memref<1x32xf32, #tpu.memory_space<vmem>>, vector<1x32xf32>
    %c0_11 = arith.constant 0 : index
    %c0_12 = arith.constant 0 : index
    %6 = vector.load %arg9[%c0_11, %c0_12] : memref<1x1xf32, #tpu.memory_space<vmem>>, vector<1x1xf32>
    %7 = tpu.iota {dimensions = array<i32: 1>} : vector<1x128xi32>
    %c64_i32 = arith.constant 64 : i32
    %8 = vector.broadcast %c64_i32 : i32 to vector<1x128xi32>
    %9 = arith.cmpi sge, %7, %8 : vector<1x128xi32>
    %c96_i32 = arith.constant 96 : i32
    %10 = vector.broadcast %c96_i32 : i32 to vector<1x128xi32>
    %11 = arith.cmpi slt, %7, %10 : vector<1x128xi32>
    %12 = arith.andi %9, %11 : vector<1x128xi1>
    %cst = arith.constant 1.000000e+00 : f32
    %cst_13 = arith.constant 5.000000e-01 : f32
    %13 = vector.broadcast %cst : f32 to vector<1x128xf32>
    %14 = vector.broadcast %cst_13 : f32 to vector<1x128xf32>
    %15 = arith.select %12, %13, %14 : vector<1x128xi1>, vector<1x128xf32>
    %cst_14 = arith.constant 0.000000e+00 : f32
    %cst_15 = arith.constant 5.000000e-01 : f32
    %16 = vector.broadcast %cst_14 : f32 to vector<1x128xf32>
    %17 = vector.broadcast %cst_15 : f32 to vector<1x128xf32>
    %18 = arith.select %12, %16, %17 : vector<1x128xi1>, vector<1x128xf32>
    %c0_16 = arith.constant 0 : index
    %c0_17 = arith.constant 0 : index
    %19 = vector.load %arg0[%c0_16, %c0_17] : memref<8x1xf32, #tpu.memory_space<vmem>>, vector<8x1xf32>
    %c0_18 = arith.constant 0 : index
    %c0_19 = arith.constant 0 : index
    %20 = vector.load %arg1[%c0_18, %c0_19] : memref<1x128xf32, #tpu.memory_space<vmem>>, vector<1x128xf32>
    %21 = vector.broadcast %19 : vector<8x1xf32> to vector<8x128xf32>
    %22 = vector.broadcast %20 : vector<1x128xf32> to vector<8x128xf32>
    %23 = arith.mulf %21, %22 : vector<8x128xf32>
    %c0_20 = arith.constant 0 : index
    %c0_21 = arith.constant 0 : index
    %24 = vector.load %arg3[%c0_20, %c0_21] : memref<1x128xf32, #tpu.memory_space<vmem>>, vector<1x128xf32>
    %25 = vector.broadcast %24 : vector<1x128xf32> to vector<8x128xf32>
    %26 = arith.addf %23, %25 : vector<8x128xf32>
    %cst_22 = arith.constant 0.000000e+00 : f32
    %27 = vector.broadcast %cst_22 : f32 to vector<1x32xf32>
    %cst_23 = arith.constant 0.000000e+00 : f32
    %28 = vector.broadcast %cst_23 : f32 to vector<1x32xf32>
    %29 = vector.extract_strided_slice %26 {offsets = [0, 0], sizes = [1, 128], strides = [1, 1]} : vector<8x128xf32> to vector<1x128xf32>
    %cst_24 = arith.constant dense<0.000000e+00> : vector<1x128xf32>
    %30 = tpu.matmul %27, %0, %cst_24 {dimension_numbers = #tpu.dot_dimension_numbers<[1], [0], [0], [1], [0, 0, 1, 1], [], []>} : vector<1x32xf32>, vector<32x128xf32>, vector<1x128xf32> -> vector<1x128xf32>
    %31 = arith.addf %29, %30 : vector<1x128xf32>
    %32 = arith.mulf %31, %15 : vector<1x128xf32>
    %33 = math.tanh %32 : vector<1x128xf32>
    %34 = arith.mulf %33, %15 : vector<1x128xf32>
    %35 = arith.addf %34, %18 : vector<1x128xf32>
    %36 = vector.extract_strided_slice %35 {offsets = [0, 0], sizes = [1, 32], strides = [1, 1]} : vector<1x128xf32> to vector<1x32xf32>
    %37 = vector.extract_strided_slice %35 {offsets = [0, 32], sizes = [1, 32], strides = [1, 1]} : vector<1x128xf32> to vector<1x32xf32>
    %38 = vector.extract_strided_slice %35 {offsets = [0, 64], sizes = [1, 32], strides = [1, 1]} : vector<1x128xf32> to vector<1x32xf32>
    %39 = vector.extract_strided_slice %35 {offsets = [0, 96], sizes = [1, 32], strides = [1, 1]} : vector<1x128xf32> to vector<1x32xf32>
    %40 = arith.mulf %37, %28 : vector<1x32xf32>
    %41 = arith.mulf %36, %38 : vector<1x32xf32>
    %42 = arith.addf %40, %41 : vector<1x32xf32>
    %43 = math.tanh %42 : vector<1x32xf32>
    %44 = arith.mulf %39, %43 : vector<1x32xf32>
    %45 = vector.extract_strided_slice %26 {offsets = [1, 0], sizes = [1, 128], strides = [1, 1]} : vector<8x128xf32> to vector<1x128xf32>
    %cst_25 = arith.constant dense<0.000000e+00> : vector<1x128xf32>
    %46 = tpu.matmul %44, %0, %cst_25 {dimension_numbers = #tpu.dot_dimension_numbers<[1], [0], [0], [1], [0, 0, 1, 1], [], []>} : vector<1x32xf32>, vector<32x128xf32>, vector<1x128xf32> -> vector<1x128xf32>
    %47 = arith.addf %45, %46 : vector<1x128xf32>
    %48 = arith.mulf %47, %15 : vector<1x128xf32>
    %49 = math.tanh %48 : vector<1x128xf32>
    %50 = arith.mulf %49, %15 : vector<1x128xf32>
    %51 = arith.addf %50, %18 : vector<1x128xf32>
    %52 = vector.extract_strided_slice %51 {offsets = [0, 0], sizes = [1, 32], strides = [1, 1]} : vector<1x128xf32> to vector<1x32xf32>
    %53 = vector.extract_strided_slice %51 {offsets = [0, 32], sizes = [1, 32], strides = [1, 1]} : vector<1x128xf32> to vector<1x32xf32>
    %54 = vector.extract_strided_slice %51 {offsets = [0, 64], sizes = [1, 32], strides = [1, 1]} : vector<1x128xf32> to vector<1x32xf32>
    %55 = vector.extract_strided_slice %51 {offsets = [0, 96], sizes = [1, 32], strides = [1, 1]} : vector<1x128xf32> to vector<1x32xf32>
    %56 = arith.mulf %53, %42 : vector<1x32xf32>
    %57 = arith.mulf %52, %54 : vector<1x32xf32>
    %58 = arith.addf %56, %57 : vector<1x32xf32>
    %59 = math.tanh %58 : vector<1x32xf32>
    %60 = arith.mulf %55, %59 : vector<1x32xf32>
    %61 = vector.extract_strided_slice %26 {offsets = [2, 0], sizes = [1, 128], strides = [1, 1]} : vector<8x128xf32> to vector<1x128xf32>
    %cst_26 = arith.constant dense<0.000000e+00> : vector<1x128xf32>
    %62 = tpu.matmul %60, %0, %cst_26 {dimension_numbers = #tpu.dot_dimension_numbers<[1], [0], [0], [1], [0, 0, 1, 1], [], []>} : vector<1x32xf32>, vector<32x128xf32>, vector<1x128xf32> -> vector<1x128xf32>
    %63 = arith.addf %61, %62 : vector<1x128xf32>
    %64 = arith.mulf %63, %15 : vector<1x128xf32>
    %65 = math.tanh %64 : vector<1x128xf32>
    %66 = arith.mulf %65, %15 : vector<1x128xf32>
    %67 = arith.addf %66, %18 : vector<1x128xf32>
    %68 = vector.extract_strided_slice %67 {offsets = [0, 0], sizes = [1, 32], strides = [1, 1]} : vector<1x128xf32> to vector<1x32xf32>
    %69 = vector.extract_strided_slice %67 {offsets = [0, 32], sizes = [1, 32], strides = [1, 1]} : vector<1x128xf32> to vector<1x32xf32>
    %70 = vector.extract_strided_slice %67 {offsets = [0, 64], sizes = [1, 32], strides = [1, 1]} : vector<1x128xf32> to vector<1x32xf32>
    %71 = vector.extract_strided_slice %67 {offsets = [0, 96], sizes = [1, 32], strides = [1, 1]} : vector<1x128xf32> to vector<1x32xf32>
    %72 = arith.mulf %69, %58 : vector<1x32xf32>
    %73 = arith.mulf %68, %70 : vector<1x32xf32>
    %74 = arith.addf %72, %73 : vector<1x32xf32>
    %75 = math.tanh %74 : vector<1x32xf32>
    %76 = arith.mulf %71, %75 : vector<1x32xf32>
    %77 = vector.extract_strided_slice %26 {offsets = [3, 0], sizes = [1, 128], strides = [1, 1]} : vector<8x128xf32> to vector<1x128xf32>
    %cst_27 = arith.constant dense<0.000000e+00> : vector<1x128xf32>
    %78 = tpu.matmul %76, %0, %cst_27 {dimension_numbers = #tpu.dot_dimension_numbers<[1], [0], [0], [1], [0, 0, 1, 1], [], []>} : vector<1x32xf32>, vector<32x128xf32>, vector<1x128xf32> -> vector<1x128xf32>
    %79 = arith.addf %77, %78 : vector<1x128xf32>
    %80 = arith.mulf %79, %15 : vector<1x128xf32>
    %81 = math.tanh %80 : vector<1x128xf32>
    %82 = arith.mulf %81, %15 : vector<1x128xf32>
    %83 = arith.addf %82, %18 : vector<1x128xf32>
    %84 = vector.extract_strided_slice %83 {offsets = [0, 0], sizes = [1, 32], strides = [1, 1]} : vector<1x128xf32> to vector<1x32xf32>
    %85 = vector.extract_strided_slice %83 {offsets = [0, 32], sizes = [1, 32], strides = [1, 1]} : vector<1x128xf32> to vector<1x32xf32>
    %86 = vector.extract_strided_slice %83 {offsets = [0, 64], sizes = [1, 32], strides = [1, 1]} : vector<1x128xf32> to vector<1x32xf32>
    %87 = vector.extract_strided_slice %83 {offsets = [0, 96], sizes = [1, 32], strides = [1, 1]} : vector<1x128xf32> to vector<1x32xf32>
    %88 = arith.mulf %85, %74 : vector<1x32xf32>
    %89 = arith.mulf %84, %86 : vector<1x32xf32>
    %90 = arith.addf %88, %89 : vector<1x32xf32>
    %91 = math.tanh %90 : vector<1x32xf32>
    %92 = arith.mulf %87, %91 : vector<1x32xf32>
    %93 = vector.extract_strided_slice %26 {offsets = [4, 0], sizes = [1, 128], strides = [1, 1]} : vector<8x128xf32> to vector<1x128xf32>
    %cst_28 = arith.constant dense<0.000000e+00> : vector<1x128xf32>
    %94 = tpu.matmul %92, %0, %cst_28 {dimension_numbers = #tpu.dot_dimension_numbers<[1], [0], [0], [1], [0, 0, 1, 1], [], []>} : vector<1x32xf32>, vector<32x128xf32>, vector<1x128xf32> -> vector<1x128xf32>
    %95 = arith.addf %93, %94 : vector<1x128xf32>
    %96 = arith.mulf %95, %15 : vector<1x128xf32>
    %97 = math.tanh %96 : vector<1x128xf32>
    %98 = arith.mulf %97, %15 : vector<1x128xf32>
    %99 = arith.addf %98, %18 : vector<1x128xf32>
    %100 = vector.extract_strided_slice %99 {offsets = [0, 0], sizes = [1, 32], strides = [1, 1]} : vector<1x128xf32> to vector<1x32xf32>
    %101 = vector.extract_strided_slice %99 {offsets = [0, 32], sizes = [1, 32], strides = [1, 1]} : vector<1x128xf32> to vector<1x32xf32>
    %102 = vector.extract_strided_slice %99 {offsets = [0, 64], sizes = [1, 32], strides = [1, 1]} : vector<1x128xf32> to vector<1x32xf32>
    %103 = vector.extract_strided_slice %99 {offsets = [0, 96], sizes = [1, 32], strides = [1, 1]} : vector<1x128xf32> to vector<1x32xf32>
    %104 = arith.mulf %101, %90 : vector<1x32xf32>
    %105 = arith.mulf %100, %102 : vector<1x32xf32>
    %106 = arith.addf %104, %105 : vector<1x32xf32>
    %107 = math.tanh %106 : vector<1x32xf32>
    %108 = arith.mulf %103, %107 : vector<1x32xf32>
    %109 = vector.extract_strided_slice %26 {offsets = [5, 0], sizes = [1, 128], strides = [1, 1]} : vector<8x128xf32> to vector<1x128xf32>
    %cst_29 = arith.constant dense<0.000000e+00> : vector<1x128xf32>
    %110 = tpu.matmul %108, %0, %cst_29 {dimension_numbers = #tpu.dot_dimension_numbers<[1], [0], [0], [1], [0, 0, 1, 1], [], []>} : vector<1x32xf32>, vector<32x128xf32>, vector<1x128xf32> -> vector<1x128xf32>
    %111 = arith.addf %109, %110 : vector<1x128xf32>
    %112 = arith.mulf %111, %15 : vector<1x128xf32>
    %113 = math.tanh %112 : vector<1x128xf32>
    %114 = arith.mulf %113, %15 : vector<1x128xf32>
    %115 = arith.addf %114, %18 : vector<1x128xf32>
    %116 = vector.extract_strided_slice %115 {offsets = [0, 0], sizes = [1, 32], strides = [1, 1]} : vector<1x128xf32> to vector<1x32xf32>
    %117 = vector.extract_strided_slice %115 {offsets = [0, 32], sizes = [1, 32], strides = [1, 1]} : vector<1x128xf32> to vector<1x32xf32>
    %118 = vector.extract_strided_slice %115 {offsets = [0, 64], sizes = [1, 32], strides = [1, 1]} : vector<1x128xf32> to vector<1x32xf32>
    %119 = vector.extract_strided_slice %115 {offsets = [0, 96], sizes = [1, 32], strides = [1, 1]} : vector<1x128xf32> to vector<1x32xf32>
    %120 = arith.mulf %117, %106 : vector<1x32xf32>
    %121 = arith.mulf %116, %118 : vector<1x32xf32>
    %122 = arith.addf %120, %121 : vector<1x32xf32>
    %123 = math.tanh %122 : vector<1x32xf32>
    %124 = arith.mulf %119, %123 : vector<1x32xf32>
    %125 = vector.extract_strided_slice %26 {offsets = [6, 0], sizes = [1, 128], strides = [1, 1]} : vector<8x128xf32> to vector<1x128xf32>
    %cst_30 = arith.constant dense<0.000000e+00> : vector<1x128xf32>
    %126 = tpu.matmul %124, %0, %cst_30 {dimension_numbers = #tpu.dot_dimension_numbers<[1], [0], [0], [1], [0, 0, 1, 1], [], []>} : vector<1x32xf32>, vector<32x128xf32>, vector<1x128xf32> -> vector<1x128xf32>
    %127 = arith.addf %125, %126 : vector<1x128xf32>
    %128 = arith.mulf %127, %15 : vector<1x128xf32>
    %129 = math.tanh %128 : vector<1x128xf32>
    %130 = arith.mulf %129, %15 : vector<1x128xf32>
    %131 = arith.addf %130, %18 : vector<1x128xf32>
    %132 = vector.extract_strided_slice %131 {offsets = [0, 0], sizes = [1, 32], strides = [1, 1]} : vector<1x128xf32> to vector<1x32xf32>
    %133 = vector.extract_strided_slice %131 {offsets = [0, 32], sizes = [1, 32], strides = [1, 1]} : vector<1x128xf32> to vector<1x32xf32>
    %134 = vector.extract_strided_slice %131 {offsets = [0, 64], sizes = [1, 32], strides = [1, 1]} : vector<1x128xf32> to vector<1x32xf32>
    %135 = vector.extract_strided_slice %131 {offsets = [0, 96], sizes = [1, 32], strides = [1, 1]} : vector<1x128xf32> to vector<1x32xf32>
    %136 = arith.mulf %133, %122 : vector<1x32xf32>
    %137 = arith.mulf %132, %134 : vector<1x32xf32>
    %138 = arith.addf %136, %137 : vector<1x32xf32>
    %139 = math.tanh %138 : vector<1x32xf32>
    %140 = arith.mulf %135, %139 : vector<1x32xf32>
    %141 = vector.extract_strided_slice %26 {offsets = [7, 0], sizes = [1, 128], strides = [1, 1]} : vector<8x128xf32> to vector<1x128xf32>
    %cst_31 = arith.constant dense<0.000000e+00> : vector<1x128xf32>
    %142 = tpu.matmul %140, %0, %cst_31 {dimension_numbers = #tpu.dot_dimension_numbers<[1], [0], [0], [1], [0, 0, 1, 1], [], []>} : vector<1x32xf32>, vector<32x128xf32>, vector<1x128xf32> -> vector<1x128xf32>
    %143 = arith.addf %141, %142 : vector<1x128xf32>
    %144 = arith.mulf %143, %15 : vector<1x128xf32>
    %145 = math.tanh %144 : vector<1x128xf32>
    %146 = arith.mulf %145, %15 : vector<1x128xf32>
    %147 = arith.addf %146, %18 : vector<1x128xf32>
    %148 = vector.extract_strided_slice %147 {offsets = [0, 0], sizes = [1, 32], strides = [1, 1]} : vector<1x128xf32> to vector<1x32xf32>
    %149 = vector.extract_strided_slice %147 {offsets = [0, 32], sizes = [1, 32], strides = [1, 1]} : vector<1x128xf32> to vector<1x32xf32>
    %150 = vector.extract_strided_slice %147 {offsets = [0, 64], sizes = [1, 32], strides = [1, 1]} : vector<1x128xf32> to vector<1x32xf32>
    %151 = vector.extract_strided_slice %147 {offsets = [0, 96], sizes = [1, 32], strides = [1, 1]} : vector<1x128xf32> to vector<1x32xf32>
    %152 = arith.mulf %149, %138 : vector<1x32xf32>
    %153 = arith.mulf %148, %150 : vector<1x32xf32>
    %154 = arith.addf %152, %153 : vector<1x32xf32>
    %155 = math.tanh %154 : vector<1x32xf32>
    %156 = arith.mulf %151, %155 : vector<1x32xf32>
    %157 = vector.broadcast %4 : vector<32x1xf32> to vector<32x128xf32>
    %158 = vector.broadcast %2 : vector<1x128xf32> to vector<32x128xf32>
    %159 = arith.mulf %157, %158 : vector<32x128xf32>
    %160 = arith.addf %1, %159 : vector<32x128xf32>
    %161 = vector.broadcast %6 : vector<1x1xf32> to vector<1x128xf32>
    %162 = arith.mulf %161, %2 : vector<1x128xf32>
    %163 = arith.addf %3, %162 : vector<1x128xf32>
    %164 = tpu.iota {dimensions = array<i32: 1>} : vector<1x8xi32>
    %cst_32 = arith.constant 0.000000e+00 : f32
    %165 = vector.broadcast %cst_32 : f32 to vector<1x8xf32>
    %cst_33 = arith.constant dense<0.000000e+00> : vector<1x128xf32>
    %166 = tpu.matmul %156, %1, %cst_33 {dimension_numbers = #tpu.dot_dimension_numbers<[1], [0], [0], [1], [0, 0, 1, 1], [], []>} : vector<1x32xf32>, vector<32x128xf32>, vector<1x128xf32> -> vector<1x128xf32>
    %167 = arith.addf %3, %166 : vector<1x128xf32>
    %168 = arith.mulf %167, %15 : vector<1x128xf32>
    %169 = math.tanh %168 : vector<1x128xf32>
    %170 = arith.mulf %169, %15 : vector<1x128xf32>
    %171 = arith.addf %170, %18 : vector<1x128xf32>
    %172 = vector.extract_strided_slice %171 {offsets = [0, 0], sizes = [1, 32], strides = [1, 1]} : vector<1x128xf32> to vector<1x32xf32>
    %173 = vector.extract_strided_slice %171 {offsets = [0, 32], sizes = [1, 32], strides = [1, 1]} : vector<1x128xf32> to vector<1x32xf32>
    %174 = vector.extract_strided_slice %171 {offsets = [0, 64], sizes = [1, 32], strides = [1, 1]} : vector<1x128xf32> to vector<1x32xf32>
    %175 = vector.extract_strided_slice %171 {offsets = [0, 96], sizes = [1, 32], strides = [1, 1]} : vector<1x128xf32> to vector<1x32xf32>
    %176 = arith.mulf %173, %154 : vector<1x32xf32>
    %177 = arith.mulf %172, %174 : vector<1x32xf32>
    %178 = arith.addf %176, %177 : vector<1x32xf32>
    %179 = math.tanh %178 : vector<1x32xf32>
    %180 = arith.mulf %175, %179 : vector<1x32xf32>
    %181 = arith.mulf %180, %5 : vector<1x32xf32>
    %cst_34 = arith.constant dense<0.000000e+00> : vector<1xf32>
    %182 = vector.multi_reduction <add>, %181, %cst_34 [1] : vector<1x32xf32> to vector<1xf32>
    %183 = vector.shape_cast %182 : vector<1xf32> to vector<1x1xf32>
    %184 = arith.addf %183, %6 : vector<1x1xf32>
    %c0_i32 = arith.constant 0 : i32
    %185 = vector.broadcast %c0_i32 : i32 to vector<1x8xi32>
    %186 = arith.cmpi eq, %164, %185 : vector<1x8xi32>
    %187 = vector.shape_cast %184 : vector<1x1xf32> to vector<1x1xf32>
    %188 = vector.broadcast %187 : vector<1x1xf32> to vector<1x8xf32>
    %189 = arith.select %186, %188, %165 : vector<1x8xi1>, vector<1x8xf32>
    %cst_35 = arith.constant dense<0.000000e+00> : vector<1x128xf32>
    %190 = tpu.matmul %180, %160, %cst_35 {dimension_numbers = #tpu.dot_dimension_numbers<[1], [0], [0], [1], [0, 0, 1, 1], [], []>} : vector<1x32xf32>, vector<32x128xf32>, vector<1x128xf32> -> vector<1x128xf32>
    %191 = arith.addf %163, %190 : vector<1x128xf32>
    %192 = arith.mulf %191, %15 : vector<1x128xf32>
    %193 = math.tanh %192 : vector<1x128xf32>
    %194 = arith.mulf %193, %15 : vector<1x128xf32>
    %195 = arith.addf %194, %18 : vector<1x128xf32>
    %196 = vector.extract_strided_slice %195 {offsets = [0, 0], sizes = [1, 32], strides = [1, 1]} : vector<1x128xf32> to vector<1x32xf32>
    %197 = vector.extract_strided_slice %195 {offsets = [0, 32], sizes = [1, 32], strides = [1, 1]} : vector<1x128xf32> to vector<1x32xf32>
    %198 = vector.extract_strided_slice %195 {offsets = [0, 64], sizes = [1, 32], strides = [1, 1]} : vector<1x128xf32> to vector<1x32xf32>
    %199 = vector.extract_strided_slice %195 {offsets = [0, 96], sizes = [1, 32], strides = [1, 1]} : vector<1x128xf32> to vector<1x32xf32>
    %200 = arith.mulf %197, %178 : vector<1x32xf32>
    %201 = arith.mulf %196, %198 : vector<1x32xf32>
    %202 = arith.addf %200, %201 : vector<1x32xf32>
    %203 = math.tanh %202 : vector<1x32xf32>
    %204 = arith.mulf %199, %203 : vector<1x32xf32>
    %205 = arith.mulf %204, %5 : vector<1x32xf32>
    %cst_36 = arith.constant dense<0.000000e+00> : vector<1xf32>
    %206 = vector.multi_reduction <add>, %205, %cst_36 [1] : vector<1x32xf32> to vector<1xf32>
    %207 = vector.shape_cast %206 : vector<1xf32> to vector<1x1xf32>
    %208 = arith.addf %207, %6 : vector<1x1xf32>
    %c1_i32 = arith.constant 1 : i32
    %209 = vector.broadcast %c1_i32 : i32 to vector<1x8xi32>
    %210 = arith.cmpi eq, %164, %209 : vector<1x8xi32>
    %211 = vector.shape_cast %208 : vector<1x1xf32> to vector<1x1xf32>
    %212 = vector.broadcast %211 : vector<1x1xf32> to vector<1x8xf32>
    %213 = arith.select %210, %212, %189 : vector<1x8xi1>, vector<1x8xf32>
    %cst_37 = arith.constant dense<0.000000e+00> : vector<1x128xf32>
    %214 = tpu.matmul %204, %160, %cst_37 {dimension_numbers = #tpu.dot_dimension_numbers<[1], [0], [0], [1], [0, 0, 1, 1], [], []>} : vector<1x32xf32>, vector<32x128xf32>, vector<1x128xf32> -> vector<1x128xf32>
    %215 = arith.addf %163, %214 : vector<1x128xf32>
    %216 = arith.mulf %215, %15 : vector<1x128xf32>
    %217 = math.tanh %216 : vector<1x128xf32>
    %218 = arith.mulf %217, %15 : vector<1x128xf32>
    %219 = arith.addf %218, %18 : vector<1x128xf32>
    %220 = vector.extract_strided_slice %219 {offsets = [0, 0], sizes = [1, 32], strides = [1, 1]} : vector<1x128xf32> to vector<1x32xf32>
    %221 = vector.extract_strided_slice %219 {offsets = [0, 32], sizes = [1, 32], strides = [1, 1]} : vector<1x128xf32> to vector<1x32xf32>
    %222 = vector.extract_strided_slice %219 {offsets = [0, 64], sizes = [1, 32], strides = [1, 1]} : vector<1x128xf32> to vector<1x32xf32>
    %223 = vector.extract_strided_slice %219 {offsets = [0, 96], sizes = [1, 32], strides = [1, 1]} : vector<1x128xf32> to vector<1x32xf32>
    %224 = arith.mulf %221, %202 : vector<1x32xf32>
    %225 = arith.mulf %220, %222 : vector<1x32xf32>
    %226 = arith.addf %224, %225 : vector<1x32xf32>
    %227 = math.tanh %226 : vector<1x32xf32>
    %228 = arith.mulf %223, %227 : vector<1x32xf32>
    %229 = arith.mulf %228, %5 : vector<1x32xf32>
    %cst_38 = arith.constant dense<0.000000e+00> : vector<1xf32>
    %230 = vector.multi_reduction <add>, %229, %cst_38 [1] : vector<1x32xf32> to vector<1xf32>
    %231 = vector.shape_cast %230 : vector<1xf32> to vector<1x1xf32>
    %232 = arith.addf %231, %6 : vector<1x1xf32>
    %c2_i32 = arith.constant 2 : i32
    %233 = vector.broadcast %c2_i32 : i32 to vector<1x8xi32>
    %234 = arith.cmpi eq, %164, %233 : vector<1x8xi32>
    %235 = vector.shape_cast %232 : vector<1x1xf32> to vector<1x1xf32>
    %236 = vector.broadcast %235 : vector<1x1xf32> to vector<1x8xf32>
    %237 = arith.select %234, %236, %213 : vector<1x8xi1>, vector<1x8xf32>
    %cst_39 = arith.constant dense<0.000000e+00> : vector<1x128xf32>
    %238 = tpu.matmul %228, %160, %cst_39 {dimension_numbers = #tpu.dot_dimension_numbers<[1], [0], [0], [1], [0, 0, 1, 1], [], []>} : vector<1x32xf32>, vector<32x128xf32>, vector<1x128xf32> -> vector<1x128xf32>
    %239 = arith.addf %163, %238 : vector<1x128xf32>
    %240 = arith.mulf %239, %15 : vector<1x128xf32>
    %241 = math.tanh %240 : vector<1x128xf32>
    %242 = arith.mulf %241, %15 : vector<1x128xf32>
    %243 = arith.addf %242, %18 : vector<1x128xf32>
    %244 = vector.extract_strided_slice %243 {offsets = [0, 0], sizes = [1, 32], strides = [1, 1]} : vector<1x128xf32> to vector<1x32xf32>
    %245 = vector.extract_strided_slice %243 {offsets = [0, 32], sizes = [1, 32], strides = [1, 1]} : vector<1x128xf32> to vector<1x32xf32>
    %246 = vector.extract_strided_slice %243 {offsets = [0, 64], sizes = [1, 32], strides = [1, 1]} : vector<1x128xf32> to vector<1x32xf32>
    %247 = vector.extract_strided_slice %243 {offsets = [0, 96], sizes = [1, 32], strides = [1, 1]} : vector<1x128xf32> to vector<1x32xf32>
    %248 = arith.mulf %245, %226 : vector<1x32xf32>
    %249 = arith.mulf %244, %246 : vector<1x32xf32>
    %250 = arith.addf %248, %249 : vector<1x32xf32>
    %251 = math.tanh %250 : vector<1x32xf32>
    %252 = arith.mulf %247, %251 : vector<1x32xf32>
    %253 = arith.mulf %252, %5 : vector<1x32xf32>
    %cst_40 = arith.constant dense<0.000000e+00> : vector<1xf32>
    %254 = vector.multi_reduction <add>, %253, %cst_40 [1] : vector<1x32xf32> to vector<1xf32>
    %255 = vector.shape_cast %254 : vector<1xf32> to vector<1x1xf32>
    %256 = arith.addf %255, %6 : vector<1x1xf32>
    %c3_i32 = arith.constant 3 : i32
    %257 = vector.broadcast %c3_i32 : i32 to vector<1x8xi32>
    %258 = arith.cmpi eq, %164, %257 : vector<1x8xi32>
    %259 = vector.shape_cast %256 : vector<1x1xf32> to vector<1x1xf32>
    %260 = vector.broadcast %259 : vector<1x1xf32> to vector<1x8xf32>
    %261 = arith.select %258, %260, %237 : vector<1x8xi1>, vector<1x8xf32>
    %cst_41 = arith.constant dense<0.000000e+00> : vector<1x128xf32>
    %262 = tpu.matmul %252, %160, %cst_41 {dimension_numbers = #tpu.dot_dimension_numbers<[1], [0], [0], [1], [0, 0, 1, 1], [], []>} : vector<1x32xf32>, vector<32x128xf32>, vector<1x128xf32> -> vector<1x128xf32>
    %263 = arith.addf %163, %262 : vector<1x128xf32>
    %264 = arith.mulf %263, %15 : vector<1x128xf32>
    %265 = math.tanh %264 : vector<1x128xf32>
    %266 = arith.mulf %265, %15 : vector<1x128xf32>
    %267 = arith.addf %266, %18 : vector<1x128xf32>
    %268 = vector.extract_strided_slice %267 {offsets = [0, 0], sizes = [1, 32], strides = [1, 1]} : vector<1x128xf32> to vector<1x32xf32>
    %269 = vector.extract_strided_slice %267 {offsets = [0, 32], sizes = [1, 32], strides = [1, 1]} : vector<1x128xf32> to vector<1x32xf32>
    %270 = vector.extract_strided_slice %267 {offsets = [0, 64], sizes = [1, 32], strides = [1, 1]} : vector<1x128xf32> to vector<1x32xf32>
    %271 = vector.extract_strided_slice %267 {offsets = [0, 96], sizes = [1, 32], strides = [1, 1]} : vector<1x128xf32> to vector<1x32xf32>
    %272 = arith.mulf %269, %250 : vector<1x32xf32>
    %273 = arith.mulf %268, %270 : vector<1x32xf32>
    %274 = arith.addf %272, %273 : vector<1x32xf32>
    %275 = math.tanh %274 : vector<1x32xf32>
    %276 = arith.mulf %271, %275 : vector<1x32xf32>
    %277 = arith.mulf %276, %5 : vector<1x32xf32>
    %cst_42 = arith.constant dense<0.000000e+00> : vector<1xf32>
    %278 = vector.multi_reduction <add>, %277, %cst_42 [1] : vector<1x32xf32> to vector<1xf32>
    %279 = vector.shape_cast %278 : vector<1xf32> to vector<1x1xf32>
    %280 = arith.addf %279, %6 : vector<1x1xf32>
    %c4_i32 = arith.constant 4 : i32
    %281 = vector.broadcast %c4_i32 : i32 to vector<1x8xi32>
    %282 = arith.cmpi eq, %164, %281 : vector<1x8xi32>
    %283 = vector.shape_cast %280 : vector<1x1xf32> to vector<1x1xf32>
    %284 = vector.broadcast %283 : vector<1x1xf32> to vector<1x8xf32>
    %285 = arith.select %282, %284, %261 : vector<1x8xi1>, vector<1x8xf32>
    %cst_43 = arith.constant dense<0.000000e+00> : vector<1x128xf32>
    %286 = tpu.matmul %276, %160, %cst_43 {dimension_numbers = #tpu.dot_dimension_numbers<[1], [0], [0], [1], [0, 0, 1, 1], [], []>} : vector<1x32xf32>, vector<32x128xf32>, vector<1x128xf32> -> vector<1x128xf32>
    %287 = arith.addf %163, %286 : vector<1x128xf32>
    %288 = arith.mulf %287, %15 : vector<1x128xf32>
    %289 = math.tanh %288 : vector<1x128xf32>
    %290 = arith.mulf %289, %15 : vector<1x128xf32>
    %291 = arith.addf %290, %18 : vector<1x128xf32>
    %292 = vector.extract_strided_slice %291 {offsets = [0, 0], sizes = [1, 32], strides = [1, 1]} : vector<1x128xf32> to vector<1x32xf32>
    %293 = vector.extract_strided_slice %291 {offsets = [0, 32], sizes = [1, 32], strides = [1, 1]} : vector<1x128xf32> to vector<1x32xf32>
    %294 = vector.extract_strided_slice %291 {offsets = [0, 64], sizes = [1, 32], strides = [1, 1]} : vector<1x128xf32> to vector<1x32xf32>
    %295 = vector.extract_strided_slice %291 {offsets = [0, 96], sizes = [1, 32], strides = [1, 1]} : vector<1x128xf32> to vector<1x32xf32>
    %296 = arith.mulf %293, %274 : vector<1x32xf32>
    %297 = arith.mulf %292, %294 : vector<1x32xf32>
    %298 = arith.addf %296, %297 : vector<1x32xf32>
    %299 = math.tanh %298 : vector<1x32xf32>
    %300 = arith.mulf %295, %299 : vector<1x32xf32>
    %301 = arith.mulf %300, %5 : vector<1x32xf32>
    %cst_44 = arith.constant dense<0.000000e+00> : vector<1xf32>
    %302 = vector.multi_reduction <add>, %301, %cst_44 [1] : vector<1x32xf32> to vector<1xf32>
    %303 = vector.shape_cast %302 : vector<1xf32> to vector<1x1xf32>
    %304 = arith.addf %303, %6 : vector<1x1xf32>
    %c5_i32 = arith.constant 5 : i32
    %305 = vector.broadcast %c5_i32 : i32 to vector<1x8xi32>
    %306 = arith.cmpi eq, %164, %305 : vector<1x8xi32>
    %307 = vector.shape_cast %304 : vector<1x1xf32> to vector<1x1xf32>
    %308 = vector.broadcast %307 : vector<1x1xf32> to vector<1x8xf32>
    %309 = arith.select %306, %308, %285 : vector<1x8xi1>, vector<1x8xf32>
    %cst_45 = arith.constant dense<0.000000e+00> : vector<1x128xf32>
    %310 = tpu.matmul %300, %160, %cst_45 {dimension_numbers = #tpu.dot_dimension_numbers<[1], [0], [0], [1], [0, 0, 1, 1], [], []>} : vector<1x32xf32>, vector<32x128xf32>, vector<1x128xf32> -> vector<1x128xf32>
    %311 = arith.addf %163, %310 : vector<1x128xf32>
    %312 = arith.mulf %311, %15 : vector<1x128xf32>
    %313 = math.tanh %312 : vector<1x128xf32>
    %314 = arith.mulf %313, %15 : vector<1x128xf32>
    %315 = arith.addf %314, %18 : vector<1x128xf32>
    %316 = vector.extract_strided_slice %315 {offsets = [0, 0], sizes = [1, 32], strides = [1, 1]} : vector<1x128xf32> to vector<1x32xf32>
    %317 = vector.extract_strided_slice %315 {offsets = [0, 32], sizes = [1, 32], strides = [1, 1]} : vector<1x128xf32> to vector<1x32xf32>
    %318 = vector.extract_strided_slice %315 {offsets = [0, 64], sizes = [1, 32], strides = [1, 1]} : vector<1x128xf32> to vector<1x32xf32>
    %319 = vector.extract_strided_slice %315 {offsets = [0, 96], sizes = [1, 32], strides = [1, 1]} : vector<1x128xf32> to vector<1x32xf32>
    %320 = arith.mulf %317, %298 : vector<1x32xf32>
    %321 = arith.mulf %316, %318 : vector<1x32xf32>
    %322 = arith.addf %320, %321 : vector<1x32xf32>
    %323 = math.tanh %322 : vector<1x32xf32>
    %324 = arith.mulf %319, %323 : vector<1x32xf32>
    %325 = arith.mulf %324, %5 : vector<1x32xf32>
    %cst_46 = arith.constant dense<0.000000e+00> : vector<1xf32>
    %326 = vector.multi_reduction <add>, %325, %cst_46 [1] : vector<1x32xf32> to vector<1xf32>
    %327 = vector.shape_cast %326 : vector<1xf32> to vector<1x1xf32>
    %328 = arith.addf %327, %6 : vector<1x1xf32>
    %c6_i32 = arith.constant 6 : i32
    %329 = vector.broadcast %c6_i32 : i32 to vector<1x8xi32>
    %330 = arith.cmpi eq, %164, %329 : vector<1x8xi32>
    %331 = vector.shape_cast %328 : vector<1x1xf32> to vector<1x1xf32>
    %332 = vector.broadcast %331 : vector<1x1xf32> to vector<1x8xf32>
    %333 = arith.select %330, %332, %309 : vector<1x8xi1>, vector<1x8xf32>
    %cst_47 = arith.constant dense<0.000000e+00> : vector<1x128xf32>
    %334 = tpu.matmul %324, %160, %cst_47 {dimension_numbers = #tpu.dot_dimension_numbers<[1], [0], [0], [1], [0, 0, 1, 1], [], []>} : vector<1x32xf32>, vector<32x128xf32>, vector<1x128xf32> -> vector<1x128xf32>
    %335 = arith.addf %163, %334 : vector<1x128xf32>
    %336 = arith.mulf %335, %15 : vector<1x128xf32>
    %337 = math.tanh %336 : vector<1x128xf32>
    %338 = arith.mulf %337, %15 : vector<1x128xf32>
    %339 = arith.addf %338, %18 : vector<1x128xf32>
    %340 = vector.extract_strided_slice %339 {offsets = [0, 0], sizes = [1, 32], strides = [1, 1]} : vector<1x128xf32> to vector<1x32xf32>
    %341 = vector.extract_strided_slice %339 {offsets = [0, 32], sizes = [1, 32], strides = [1, 1]} : vector<1x128xf32> to vector<1x32xf32>
    %342 = vector.extract_strided_slice %339 {offsets = [0, 64], sizes = [1, 32], strides = [1, 1]} : vector<1x128xf32> to vector<1x32xf32>
    %343 = vector.extract_strided_slice %339 {offsets = [0, 96], sizes = [1, 32], strides = [1, 1]} : vector<1x128xf32> to vector<1x32xf32>
    %344 = arith.mulf %341, %322 : vector<1x32xf32>
    %345 = arith.mulf %340, %342 : vector<1x32xf32>
    %346 = arith.addf %344, %345 : vector<1x32xf32>
    %347 = math.tanh %346 : vector<1x32xf32>
    %348 = arith.mulf %343, %347 : vector<1x32xf32>
    %349 = arith.mulf %348, %5 : vector<1x32xf32>
    %cst_48 = arith.constant dense<0.000000e+00> : vector<1xf32>
    %350 = vector.multi_reduction <add>, %349, %cst_48 [1] : vector<1x32xf32> to vector<1xf32>
    %351 = vector.shape_cast %350 : vector<1xf32> to vector<1x1xf32>
    %352 = arith.addf %351, %6 : vector<1x1xf32>
    %c7_i32 = arith.constant 7 : i32
    %353 = vector.broadcast %c7_i32 : i32 to vector<1x8xi32>
    %354 = arith.cmpi eq, %164, %353 : vector<1x8xi32>
    %355 = vector.shape_cast %352 : vector<1x1xf32> to vector<1x1xf32>
    %356 = vector.broadcast %355 : vector<1x1xf32> to vector<1x8xf32>
    %357 = arith.select %354, %356, %333 : vector<1x8xi1>, vector<1x8xf32>
    %c0_49 = arith.constant 0 : index
    %c0_50 = arith.constant 0 : index
    %358 = vector.load %arg10[%c0_49, %c0_50] : memref<1x8xf32, #tpu.memory_space<vmem>>, vector<1x8xf32>
    tpu.vector_store %arg10[%c0_49, %c0_50], %357 {strides = array<i32>} : memref<1x8xf32, #tpu.memory_space<vmem>>, vector<1x8xf32>,
    return
  }
}

</mosaic_0001>

<bundles_post_ra>
// kernel: tpu_custom_call.1
= control target key start
LH: loop header
LB: loop body
LE: loop exit
PB: predicated region body
PF: predicated region fallthrough
CT: control target
= control target key end

     0   :  { %s3055_s0 = inlined_call_operand.vmem [shape: f32[8,1], index: 0, kind: input, shape index: {}]   ;;  %s3056_s1 = inlined_call_operand.hbm [shape: f32[1,128], index: 1, kind: input, shape index: {}]   ;;  %s3057_s2 = inlined_call_operand.vmem [shape: f32[32,128], index: 2, kind: input, shape index: {}]   ;;  %s3058_s3 = inlined_call_operand.hbm [shape: f32[1,128], index: 3, kind: input, shape index: {}]   ;;  %s3059_s4 = inlined_call_operand.hbm [shape: f32[1,128], index: 4, kind: input, shape index: {}]   ;;  %s3060_s5 = inlined_call_operand.vmem [shape: f32[32,128], index: 5, kind: input, shape index: {}]   ;;  %s3061_s6 = inlined_call_operand.vmem [shape: f32[1,128], index: 6, kind: input, shape index: {}]   ;;  %s3062_s7 = inlined_call_operand.vmem [shape: f32[32,1], index: 7, kind: input, shape index: {}]   ;;  %s3063_s8 = inlined_call_operand.vmem [shape: f32[1,32], index: 8, kind: input, shape index: {}]   ;;  %s3064_s9 = inlined_call_operand.<no memory space> [shape: f32[1,1], index: 9, kind: input, shape index: {}]   ;;  %s3065_s10 = inlined_call_operand.hbm [shape: f32[1,8], index: 10, kind: output, shape index: {}]  }
   0x1   :  { %v15_v0 = vstv %s3064_s9 }
   0x2   :  { %16 = vst [vmem:[#allocation2] sm:$0x1] %v15_v0 }
   0x3   :  { %17 = vsyncpa [#allocation4], 0 }
   0x4   :  { %18 = vsyncpa [#allocation7], 0 }
   0x5   :  { %19 = vsyncpa [#allocation5], 0  ;;  %s2535_s15 = smov [#allocation6]   ;;  %s2536_s17 = smov [#allocation3]  }
   0x6   :  { %s40_s16 = sshll.u32 %s2535_s15, 4  ;;  %s28_s18 = sshll.u32 %s2536_s17, 4  ;;  %s41_s16 = int_to_ptr.vmem [resolvable:$true] %s40_s16  ;;  %s29_s18 = int_to_ptr.vmem [resolvable:$true] %s28_s18 }
   0x7   :  { %s2441_s21 = scalar_lea.hbm %s3058_s3, 16 }
   0x8   :  { %p2442_p0 = scmp.ne.s32.totalorder %s3058_s3, %s2441_s21  ;;  %p2445_p1 = scmp.lt.u32.totalorder %s2441_s21, %s3058_s3 }
   0xa   :  { %p2447_p2 = pnand %p2445_p1, %p2442_p0 }
   0xc   :  { %2450 = shalt.err (!%p2447_p2)
}
   0xd   :  { %s2451_s25 = scalar_lea.vmem %s41_s16, 16  ;;  %s2455_s26 = scalar_lea.vmem %s41_s16, 32 }
   0xe   :  { %p2452_p3 = scmp.ne.s32.totalorder %s41_s16, %s2451_s25  ;;  %p2456_p4 = scmp.lt.s32.totalorder %s41_s16, %s41_s16 }
   0xf   :  { %p2457_p5 = scmp.lt.s32.totalorder %s2455_s26, %s2451_s25 }
  0x11   :  { %p2458_p6 = por %p2457_p5, %p2456_p4 }
  0x13   :  { %p2459_p7 = pnand %p2458_p6, %p2452_p3 }
  0x15   :  { %2462 = shalt.err (!%p2459_p7)
}
  0x16   :  { %43 = dma.hbm_to_vmem [thread:$0]  %s3058_s3, 16, %s41_s16, [#allocation7]  }
  0x17   :  { %s2463_s11 = scalar_lea.hbm %s3056_s1, 16 }
  0x18   :  { %p2464_p8 = scmp.ne.s32.totalorder %s3056_s1, %s2463_s11  ;;  %p2467_p9 = scmp.lt.u32.totalorder %s2463_s11, %s3056_s1 }
  0x1a   :  { %p2469_p10 = pnand %p2467_p9, %p2464_p8 }
  0x1c   :  { %2472 = shalt.err (!%p2469_p10)
}
  0x1d   :  { %s2473_s17 = scalar_lea.vmem %s29_s18, 16  ;;  %s2477_s19 = scalar_lea.vmem %s29_s18, 32 }
  0x1e   :  { %p2474_p11 = scmp.ne.s32.totalorder %s29_s18, %s2473_s17  ;;  %p2478_p12 = scmp.lt.s32.totalorder %s29_s18, %s29_s18 }
  0x1f   :  { %p2479_p13 = scmp.lt.s32.totalorder %s2477_s19, %s2473_s17 }
  0x21   :  { %p2480_p0 = por %p2479_p13, %p2478_p12 }
  0x23   :  { %p2481_p1 = pnand %p2480_p0, %p2474_p11 }
  0x25   :  { %2484 = shalt.err (!%p2481_p1)
}
  0x26   :  { %31 = dma.hbm_to_vmem [thread:$0]  %s3056_s1, 16, %s29_s18, [#allocation4]  }
  0x27   :  { %s2537_s20 = smov [#allocation8]   ;;  %s2485_s24 = scalar_lea.hbm %s3059_s4, 16 }
  0x28   :  { %s50_s21 = sshll.u32 %s2537_s20, 4  ;;  %p2486_p2 = scmp.ne.s32.totalorder %s3059_s4, %s2485_s24  ;;  %s51_s21 = int_to_ptr.vmem [resolvable:$true] %s50_s21 }
  0x29   :  { %p2489_p3 = scmp.lt.u32.totalorder %s2485_s24, %s3059_s4 }
  0x2b   :  { %p2491_p4 = pnand %p2489_p3, %p2486_p2 }
  0x2d   :  { %2494 = shalt.err (!%p2491_p4)
}
  0x2e   :  { %s2495_s28 = scalar_lea.vmem %s51_s21, 16  ;;  %s2499_s1 = scalar_lea.vmem %s51_s21, 32 }
  0x2f   :  { %p2496_p5 = scmp.ne.s32.totalorder %s51_s21, %s2495_s28  ;;  %p2500_p6 = scmp.lt.s32.totalorder %s51_s21, %s51_s21 }
  0x30   :  { %p2501_p7 = scmp.lt.s32.totalorder %s2499_s1, %s2495_s28 }
  0x32   :  { %p2502_p8 = por %p2501_p7, %p2500_p6 }
  0x34   :  { %p2503_p9 = pnand %p2502_p8, %p2496_p5 }
  0x36   :  { %2506 = shalt.err (!%p2503_p9)
}
  0x37   :  { %53 = dma.hbm_to_vmem [thread:$0]  %s3059_s4, 16, %s51_s21, [#allocation7]  }
  0x38   :  { %2529 = dma.done.wait [#allocation4], 16  }
  0x39   :  { %2530 = vsyncadd [#allocation4], 4294967280 }
  0x3a   :  { %2531 = dma.done.wait [#allocation7], 32  }
  0x3b   :  { %2532 = vsyncadd [#allocation7], 4294967264  ;;  %v2538_v1 = vmov 0.0|0.0   ;;  %vm2539_vm0 = vmmov 0   ;;  %v2540_v2 = vmov 0.0   ;;  %v2541_v3 = vmov 0  }
  0x3c   :  { %2266 = vmatprep.subr.bf16.mxu0 %v2538_v1  ;;  %2098 = vmatprep.mubr.msk.f32.mxu0 %vm2539_vm0, %v2540_v2  ;;  %v73_v4 = vld [vmem:[%s3057_s2] sm:$0xff]  ;;  %v74_v5 = vld [vmem:[%s3057_s2 + $0x8] sm:$0xff]  ;;  %v75_v6 = vld [vmem:[%s3057_s2 + $0x10] sm:$0xff]  ;;  %v89_v11 = vlaneseq  ;;  %v2542_v18 = vmov 0.5   ;;  %vm118_vm4 = vcmask 261120   ;;  %s2546_s12 = smov 96  }
  0x3d   :  { %2375 = vset.pattern.permute.xlu0 %v2541_v3  ;;  %2272 = vmatprep.subr.bf16.mxu1 %v2538_v1  ;;  %v2657_v7 = vpack.c.bf16 %v74_v5, %v73_v4  ;;  %v76_v8 = vld [vmem:[%s3057_s2 + $0x18] sm:$0xff]  ;;  %v96_v9 = vld [vmem:[%s3055_s0] sm:$0xff]  ;;  %s2543_s0 = smov 64   ;;  %s2544_s2 = smov 32   ;;  %vm1116_vm5 = vcmask 253952   ;;  %vm1975_vm14 = vcmask 57344  }
  0x3e   :  { %2109 = vmatprep.mubr.msk.f32.mxu1 %vm2539_vm0, %v2540_v2  ;;  %2376 = vset.pattern.permute.xlu1 %v2541_v3  ;;  %v2666_v10 = vpack.c.bf16 %v76_v8, %v75_v6  ;;  %v1993_v12 = vld [vmem:[#allocation3] ss:$0 sm:$0xff]  ;;  %v2683_v14 = vand.u32 127, %v89_v11  ;;  %v1994_v16 = vld [vmem:[#allocation6] ss:$0 sm:$0xff] }
  0x3f   :  { %100 = vperm.xlu0 %2375, %v96_v9   ;;  %2268 = vmatpush3.bf16.msra.mxu0 %v2657_v7 }
  0x40   :  { %2274 = vmatpush3.bf16.msra.mxu1 %v2657_v7  ;;  %2269 = vmatprep.subr.bf16.mxu0 %v2538_v1  ;;  %vm91_vm1 = vcmp.ge.s32.totalorder %v2683_v14, 64  ;;  %vm92_vm2 = vcmp.lt.s32.totalorder %v2683_v14, 96  ;;  %vm1121_vm6 = vcmp.eq.s32.totalorder %v2683_v14, 0  ;;  %vm1242_vm7 = vcmp.eq.s32.totalorder %v2683_v14, 1 }
  0x41   :  { %2275 = vmatprep.subr.bf16.mxu1 %v2538_v1  ;;  %vm93_vm3 = vmand %vm91_vm1, %vm92_vm2  ;;  %vm1363_vm8 = vcmp.eq.s32.totalorder %v2683_v14, 2  ;;  %vm1484_vm9 = vcmp.eq.s32.totalorder %v2683_v14, 3  ;;  %vm1605_vm10 = vcmp.eq.s32.totalorder %v2683_v14, 4  ;;  %vm1726_vm11 = vcmp.eq.s32.totalorder %v2683_v14, 5 }
  0x42   :  { %v2689_v19 = vsel %vm93_vm3, 1.0, %v2542_v18  ;;  %v2693_v25 = vsel %vm93_vm3, 0.0, %v2542_v18  ;;  %vm1847_vm12 = vcmp.eq.s32.totalorder %v2683_v14, 6  ;;  %vm1968_vm13 = vcmp.eq.s32.totalorder %v2683_v14, 7 }
  0x43   :  { %2271 = vmatpush3.bf16.msra.mxu0 %v2666_v10 }
  0x44   :  { %2277 = vmatpush3.bf16.msra.mxu1 %v2666_v10  ;;  %2278 = vmatprep.subr.bf16.mxu0 %v2538_v1 }
  0x45   :  { %2284 = vmatprep.subr.bf16.mxu1 %v2538_v1 }
  0x46   :  { %2099 = vmatmul.mubr.f32.vlgmr.msra.gmra.mrb[0].mxu0 %v2540_v2 }
  0x47   :  { %2280 = vmatpush3.bf16.msra.mxu0 %v2657_v7  ;;  %2120 = vmatprep.mubr.msk.f32.mxu0 %vm2539_vm0, %v2540_v2 }
  0x48   :  { %2281 = vmatprep.subr.bf16.mxu0 %v2538_v1 }
  0x4b   :  { %2283 = vmatpush3.bf16.msra.mxu0 %v2666_v10 }
  0x4c   :  { %2290 = vmatprep.subr.bf16.mxu0 %v2538_v1 }
  0xbe   :  { %v101_v13 = vpop.permute.xlu0 %100 }
  0xbf   :  { %v109_v15 = vmul.f32 %v1993_v12, %v101_v13 }
  0xc1   :  { %v2687_v17 = vadd.f32 %v1994_v16, %v109_v15 }
 0x119   :  { %v188_v20 = vpop.f32.mrb[0].mxu0 }
 0x11a   :  { %v192_v21 = vadd.f32 %v188_v20, %v2687_v17  ;;  %v2100_v22 = vpop.f32.mrb[1].mxu0 }
 0x11c   :  { %v193_v23 = vmul.f32 %v192_v21, %v2689_v19 }
 0x11e   :  { %2377 = vtanh.f32 %v193_v23 }
 0x128   :  { %v2378_v24 = vpop.eup %2377 }
 0x129   :  { %v195_v26 = vmul.f32 %v2378_v24, %v2689_v19 }
 0x12b   :  { %v196_v27 = vadd.f32 %v195_v26, %v2693_v25 }
 0x12d   :  { %199 = vrot.lane.b32.xlu0 %v196_v27, %s2543_s0  ;;  %v197_v30 = vmul.f32 0.0, %v196_v27 }
 0x19f   :  { %v200_v28 = vpop.permute.xlu0 %199 }
 0x1a0   :  { %v202_v29 = vmul.f32 %v200_v28, %v196_v27 }
 0x1a2   :  { %204 = vrot.lane.b32.xlu1 %v202_v29, %s2544_s2 }
 0x214   :  { %v205_v31 = vpop.permute.xlu1 %204 }
 0x215   :  { %v207_v32 = vadd.f32 %v205_v31, %v197_v30 }
 0x217   :  { %2379 = vtanh.f32 %v207_v32  ;;  %v298_v47 = vrot.slane %v207_v32, 7 }
 0x221   :  { %v2380_v33 = vpop.eup %2379 }
 0x222   :  { %210 = vrot.lane.b32.xlu1 %v2380_v33, %s2543_s0 }
 0x294   :  { %v211_v34 = vpop.permute.xlu1 %210 }
 0x295   :  { %v213_v35 = vmul.f32 %v211_v34, %v196_v27 }
 0x297   :  { %215 = vrot.lane.b32.xlu0 %v213_v35, %s2544_s2 }
 0x309   :  { %v216_v36 = vpop.permute.xlu0 %215 }
 0x30a   :  { %2110 = vmatmul.mubr.msk.f32.vlgmr.msra.gmra.mrb[0].mxu1 %vm118_vm4, %v216_v36 }
 0x30b   :  { %2286 = vmatpush3.bf16.msra.mxu1 %v2657_v7  ;;  %2131 = vmatprep.mubr.msk.f32.mxu1 %vm2539_vm0, %v2540_v2 }
 0x30c   :  { %2287 = vmatprep.subr.bf16.mxu1 %v2538_v1 }
 0x30f   :  { %2289 = vmatpush3.bf16.msra.mxu1 %v2666_v10 }
 0x310   :  { %2296 = vmatprep.subr.bf16.mxu1 %v2538_v1 }
 0x3dd   :  { %v285_v37 = vpop.f32.mrb[0].mxu1 }
 0x3de   :  { %v290_v38 = vrot.slane %v285_v37, 7  ;;  %v2111_v39 = vpop.f32.mrb[1].mxu1 }
 0x3e0   :  { %v292_v40 = vadd.f32 %v290_v38, %v2687_v17 }
 0x3e2   :  { %v293_v41 = vmul.f32 %v292_v40, %v2689_v19 }
 0x3e4   :  { %2381 = vtanh.f32 %v293_v41 }
 0x3ee   :  { %v2382_v42 = vpop.eup %2381 }
 0x3ef   :  { %v295_v43 = vmul.f32 %v2382_v42, %v2689_v19 }
 0x3f1   :  { %v296_v44 = vadd.f32 %v295_v43, %v2693_v25 }
 0x3f3   :  { %302 = vrot.lane.b32.xlu1 %v296_v44, %s2543_s0  ;;  %v300_v48 = vmul.f32 %v298_v47, %v296_v44 }
 0x465   :  { %v303_v45 = vpop.permute.xlu1 %302 }
 0x466   :  { %v305_v46 = vmul.f32 %v303_v45, %v296_v44 }
 0x468   :  { %307 = vrot.lane.b32.xlu0 %v305_v46, %s2544_s2 }
 0x4da   :  { %v308_v49 = vpop.permute.xlu0 %307 }
 0x4db   :  { %v310_v50 = vadd.f32 %v308_v49, %v300_v48 }
 0x4dd   :  { %2383 = vtanh.f32 %v310_v50  ;;  %v402_v4 = vrot.slane %v310_v50, 7 }
 0x4e7   :  { %v2384_v51 = vpop.eup %2383 }
 0x4e8   :  { %313 = vrot.lane.b32.xlu1 %v2384_v51, %s2543_s0 }
 0x55a   :  { %v314_v52 = vpop.permute.xlu1 %313 }
 0x55b   :  { %v316_v53 = vmul.f32 %v314_v52, %v296_v44 }
 0x55d   :  { %v318_v54 = vrot.slane %v316_v53, 1 }
 0x55f   :  { %319 = vrot.lane.b32.xlu0 %v318_v54, %s2544_s2 }
 0x5d1   :  { %v320_v55 = vpop.permute.xlu0 %319 }
 0x5d2   :  { %2121 = vmatmul.mubr.msk.f32.vlgmr.msra.gmra.mrb[2].mxu0 %vm118_vm4, %v320_v55 }
 0x5d3   :  { %2292 = vmatpush3.bf16.msra.mxu0 %v2657_v7  ;;  %2142 = vmatprep.mubr.msk.f32.mxu0 %vm2539_vm0, %v2540_v2 }
 0x5d4   :  { %2293 = vmatprep.subr.bf16.mxu0 %v2538_v1 }
 0x5d7   :  { %2295 = vmatpush3.bf16.msra.mxu0 %v2666_v10 }
 0x5d8   :  { %2302 = vmatprep.subr.bf16.mxu0 %v2538_v1 }
 0x6a5   :  { %v389_v56 = vpop.f32.mrb[2].mxu0 }
 0x6a6   :  { %v394_v57 = vrot.slane %v389_v56, 6  ;;  %v2122_v58 = vpop.f32.mrb[3].mxu0 }
 0x6a8   :  { %v396_v59 = vadd.f32 %v394_v57, %v2687_v17 }
 0x6aa   :  { %v397_v60 = vmul.f32 %v396_v59, %v2689_v19 }
 0x6ac   :  { %2385 = vtanh.f32 %v397_v60 }
 0x6b6   :  { %v2386_v61 = vpop.eup %2385 }
 0x6b7   :  { %v399_v62 = vmul.f32 %v2386_v61, %v2689_v19 }
 0x6b9   :  { %v400_v63 = vadd.f32 %v399_v62, %v2693_v25 }
 0x6bb   :  { %406 = vrot.lane.b32.xlu1 %v400_v63, %s2543_s0  ;;  %v404_v5 = vmul.f32 %v402_v4, %v400_v63 }
 0x72d   :  { %v407_v0 = vpop.permute.xlu1 %406 }
 0x72e   :  { %v409_v3 = vmul.f32 %v407_v0, %v400_v63 }
 0x730   :  { %411 = vrot.lane.b32.xlu0 %v409_v3, %s2544_s2 }
 0x7a2   :  { %v412_v6 = vpop.permute.xlu0 %411 }
 0x7a3   :  { %v414_v8 = vadd.f32 %v412_v6, %v404_v5 }
 0x7a5   :  { %2387 = vtanh.f32 %v414_v8  ;;  %v506_v30 = vrot.slane %v414_v8, 7 }
 0x7af   :  { %v2388_v9 = vpop.eup %2387 }
 0x7b0   :  { %417 = vrot.lane.b32.xlu1 %v2388_v9, %s2543_s0 }
 0x822   :  { %v418_v12 = vpop.permute.xlu1 %417 }
 0x823   :  { %v420_v13 = vmul.f32 %v418_v12, %v400_v63 }
 0x825   :  { %v422_v15 = vrot.slane %v420_v13, 2 }
 0x827   :  { %423 = vrot.lane.b32.xlu0 %v422_v15, %s2544_s2 }
 0x899   :  { %v424_v16 = vpop.permute.xlu0 %423 }
 0x89a   :  { %2132 = vmatmul.mubr.msk.f32.vlgmr.msra.gmra.mrb[2].mxu1 %vm118_vm4, %v424_v16 }
 0x89b   :  { %2298 = vmatpush3.bf16.msra.mxu1 %v2657_v7  ;;  %2153 = vmatprep.mubr.msk.f32.mxu1 %vm2539_vm0, %v2540_v2 }
 0x89c   :  { %2299 = vmatprep.subr.bf16.mxu1 %v2538_v1 }
 0x89f   :  { %2301 = vmatpush3.bf16.msra.mxu1 %v2666_v10 }
 0x8a0   :  { %2308 = vmatprep.subr.bf16.mxu1 %v2538_v1 }
 0x96d   :  { %v493_v18 = vpop.f32.mrb[2].mxu1 }
 0x96e   :  { %v498_v20 = vrot.slane %v493_v18, 5  ;;  %v2133_v21 = vpop.f32.mrb[3].mxu1 }
 0x970   :  { %v500_v22 = vadd.f32 %v498_v20, %v2687_v17 }
 0x972   :  { %v501_v23 = vmul.f32 %v500_v22, %v2689_v19 }
 0x974   :  { %2389 = vtanh.f32 %v501_v23 }
 0x97e   :  { %v2390_v24 = vpop.eup %2389 }
 0x97f   :  { %v503_v26 = vmul.f32 %v2390_v24, %v2689_v19 }
 0x981   :  { %v504_v27 = vadd.f32 %v503_v26, %v2693_v25 }
 0x983   :  { %510 = vrot.lane.b32.xlu1 %v504_v27, %s2543_s0  ;;  %v508_v31 = vmul.f32 %v506_v30, %v504_v27 }
 0x9f5   :  { %v511_v28 = vpop.permute.xlu1 %510 }
 0x9f6   :  { %v513_v29 = vmul.f32 %v511_v28, %v504_v27 }
 0x9f8   :  { %515 = vrot.lane.b32.xlu0 %v513_v29, %s2544_s2 }
 0xa6a   :  { %v516_v32 = vpop.permute.xlu0 %515 }
 0xa6b   :  { %v518_v33 = vadd.f32 %v516_v32, %v508_v31 }
 0xa6d   :  { %2391 = vtanh.f32 %v518_v33  ;;  %v610_v49 = vrot.slane %v518_v33, 7 }
 0xa77   :  { %v2392_v34 = vpop.eup %2391 }
 0xa78   :  { %521 = vrot.lane.b32.xlu1 %v2392_v34, %s2543_s0 }
 0xaea   :  { %v522_v35 = vpop.permute.xlu1 %521 }
 0xaeb   :  { %v524_v36 = vmul.f32 %v522_v35, %v504_v27 }
 0xaed   :  { %v526_v37 = vrot.slane %v524_v36, 3 }
 0xaef   :  { %527 = vrot.lane.b32.xlu0 %v526_v37, %s2544_s2 }
 0xb61   :  { %v528_v38 = vpop.permute.xlu0 %527 }
 0xb62   :  { %2143 = vmatmul.mubr.msk.f32.vlgmr.msra.gmra.mrb[4].mxu0 %vm118_vm4, %v528_v38 }
 0xb63   :  { %2304 = vmatpush3.bf16.msra.mxu0 %v2657_v7  ;;  %2164 = vmatprep.mubr.msk.f32.mxu0 %vm2539_vm0, %v2540_v2 }
 0xb64   :  { %2305 = vmatprep.subr.bf16.mxu0 %v2538_v1 }
 0xb67   :  { %2307 = vmatpush3.bf16.msra.mxu0 %v2666_v10 }
 0xb68   :  { %2314 = vmatprep.subr.bf16.mxu0 %v2538_v1 }
 0xc35   :  { %v597_v39 = vpop.f32.mrb[4].mxu0 }
 0xc36   :  { %v602_v40 = vrot.slane %v597_v39, 4  ;;  %v2144_v41 = vpop.f32.mrb[5].mxu0 }
 0xc38   :  { %v604_v42 = vadd.f32 %v602_v40, %v2687_v17 }
 0xc3a   :  { %v605_v43 = vmul.f32 %v604_v42, %v2689_v19 }
 0xc3c   :  { %2393 = vtanh.f32 %v605_v43 }
 0xc46   :  { %v2394_v44 = vpop.eup %2393 }
 0xc47   :  { %v607_v45 = vmul.f32 %v2394_v44, %v2689_v19 }
 0xc49   :  { %v608_v46 = vadd.f32 %v607_v45, %v2693_v25 }
 0xc4b   :  { %614 = vrot.lane.b32.xlu1 %v608_v46, %s2543_s0  ;;  %v612_v50 = vmul.f32 %v610_v49, %v608_v46 }
 0xcbd   :  { %v615_v47 = vpop.permute.xlu1 %614 }
 0xcbe   :  { %v617_v48 = vmul.f32 %v615_v47, %v608_v46 }
 0xcc0   :  { %619 = vrot.lane.b32.xlu0 %v617_v48, %s2544_s2 }
 0xd32   :  { %v620_v51 = vpop.permute.xlu0 %619 }
 0xd33   :  { %v622_v52 = vadd.f32 %v620_v51, %v612_v50 }
 0xd35   :  { %2395 = vtanh.f32 %v622_v52 }
 0xd3f   :  { %v2396_v53 = vpop.eup %2395 }
 0xd40   :  { %625 = vrot.lane.b32.xlu1 %v2396_v53, %s2543_s0  ;;  %v2804_v53 = vld [vmem:[%s3060_s5 + $0x8] sm:$0xff] }
 0xdb2   :  { %v626_v54 = vpop.permute.xlu1 %625 }
 0xdb3   :  { %v628_v55 = vmul.f32 %v626_v54, %v608_v46  ;;  %v2809_v54 = vld [vmem:[%s3060_s5 + $0x10] sm:$0xff] }
 0xdb5   :  { %v630_v56 = vrot.slane %v628_v55, 4 }
 0xdb7   :  { %631 = vrot.lane.b32.xlu0 %v630_v56, %s2544_s2  ;;  %v2816_v56 = vld [vmem:[%s3060_s5 + $0x18] sm:$0xff] }
 0xe29   :  { %v632_v57 = vpop.permute.xlu0 %631 }
 0xe2a   :  { %2154 = vmatmul.mubr.msk.f32.vlgmr.msra.gmra.mrb[4].mxu1 %vm118_vm4, %v632_v57  ;;  %v2318_v57 = vpack.c.bf16 %v2816_v56, %v2809_v54 }
 0xe2b   :  { %2310 = vmatpush3.bf16.msra.mxu1 %v2657_v7  ;;  %2175 = vmatprep.mubr.msk.f32.mxu1 %vm2539_vm0, %v2540_v2 }
 0xe2c   :  { %2311 = vmatprep.subr.bf16.mxu1 %v2538_v1 }
 0xe2f   :  { %2313 = vmatpush3.bf16.msra.mxu1 %v2666_v10  ;;  %v714_v10 = vrot.slane %v622_v52, 7 }
 0xe30   :  { %2320 = vmatprep.subr.bf16.mxu1 %v2538_v1 }
 0xefd   :  { %v701_v58 = vpop.f32.mrb[4].mxu1 }
 0xefe   :  { %v706_v59 = vrot.slane %v701_v58, 3  ;;  %v2155_v60 = vpop.f32.mrb[5].mxu1 }
 0xf00   :  { %v708_v61 = vadd.f32 %v706_v59, %v2687_v17 }
 0xf02   :  { %v709_v62 = vmul.f32 %v708_v61, %v2689_v19 }
 0xf04   :  { %2397 = vtanh.f32 %v709_v62 }
 0xf0e   :  { %v2398_v63 = vpop.eup %2397 }
 0xf0f   :  { %v711_v7 = vmul.f32 %v2398_v63, %v2689_v19  ;;  %v2830_v63 = vld [vmem:[%s3061_s6] sm:$0x1] }
 0xf11   :  { %v712_v0 = vadd.f32 %v711_v7, %v2693_v25 }
 0xf13   :  { %718 = vrot.lane.b32.xlu1 %v712_v0, %s2543_s0  ;;  %v716_v5 = vmul.f32 %v714_v10, %v712_v0 }
 0xf85   :  { %v719_v3 = vpop.permute.xlu1 %718 }
 0xf86   :  { %v721_v4 = vmul.f32 %v719_v3, %v712_v0 }
 0xf88   :  { %723 = vrot.lane.b32.xlu0 %v721_v4, %s2544_s2 }
 0xffa   :  { %v724_v6 = vpop.permute.xlu0 %723 }
 0xffb   :  { %v726_v8 = vadd.f32 %v724_v6, %v716_v5 }
 0xffd   :  { %2399 = vtanh.f32 %v726_v8  ;;  %v818_v30 = vrot.slane %v726_v8, 7 }
0x1007   :  { %v2400_v9 = vpop.eup %2399 }
0x1008   :  { %729 = vrot.lane.b32.xlu1 %v2400_v9, %s2543_s0 }
0x107a   :  { %v730_v12 = vpop.permute.xlu1 %729 }
0x107b   :  { %v732_v13 = vmul.f32 %v730_v12, %v712_v0  ;;  %v83_v12 = vld [vmem:[%s3062_s7] sm:$0xff] }
0x107d   :  { %v734_v15 = vrot.slane %v732_v13, 5  ;;  %v85_v13 = vld [vmem:[%s3062_s7 + $0x10] sm:$0xff] }
0x107f   :  { %735 = vrot.lane.b32.xlu0 %v734_v15, %s2544_s2  ;;  %v2545_v15 = vmov 1966171168  }
0x10f1   :  { %v736_v16 = vpop.permute.xlu0 %735 }
0x10f2   :  { %2165 = vmatmul.mubr.msk.f32.vlgmr.msra.gmra.mrb[6].mxu0 %vm118_vm4, %v736_v16  ;;  %v1070_v16 = vunpack.c.l.s4 %v2545_v15 }
0x10f3   :  { %2186 = vmatprep.mubr.msk.f32.mxu0 %vm2539_vm0, %v2540_v2 }
0x11c5   :  { %v805_v18 = vpop.f32.mrb[6].mxu0 }
0x11c6   :  { %v810_v20 = vrot.slane %v805_v18, 2  ;;  %v2166_v21 = vpop.f32.mrb[7].mxu0  ;;  %v963_v18 = vshrl.u32 %v89_v11, 7  ;;  %v86_v11 = vld [vmem:[%s3062_s7 + $0x18] sm:$0xff] }
0x11c8   :  { %v812_v22 = vadd.f32 %v810_v20, %v2687_v17  ;;  %v1071_v20 = vunpack.c.0.s8 %v1070_v16 }
0x11ca   :  { %v813_v23 = vmul.f32 %v812_v22, %v2689_v19  ;;  %v1074_v21 = vsub.s32 %v1071_v20, %v963_v18 }
0x11cc   :  { %2401 = vtanh.f32 %v813_v23 }
0x11d6   :  { %v2402_v24 = vpop.eup %2401 }
0x11d7   :  { %v815_v26 = vmul.f32 %v2402_v24, %v2689_v19 }
0x11d9   :  { %v816_v27 = vadd.f32 %v815_v26, %v2693_v25 }
0x11db   :  { %822 = vrot.lane.b32.xlu1 %v816_v27, %s2543_s0  ;;  %v820_v31 = vmul.f32 %v818_v30, %v816_v27 }
0x124d   :  { %v823_v28 = vpop.permute.xlu1 %822 }
0x124e   :  { %v825_v29 = vmul.f32 %v823_v28, %v816_v27 }
0x1250   :  { %827 = vrot.lane.b32.xlu0 %v825_v29, %s2544_s2 }
0x12c2   :  { %v828_v32 = vpop.permute.xlu0 %827 }
0x12c3   :  { %v830_v33 = vadd.f32 %v828_v32, %v820_v31  ;;  %v84_v32 = vld [vmem:[%s3062_s7 + $0x8] sm:$0xff] }
0x12c5   :  { %2403 = vtanh.f32 %v830_v33  ;;  %v922_v49 = vrot.slane %v830_v33, 7  ;;  %v2852_v33 = vld [vmem:[#allocation2] sm:$0x1] }
0x12cf   :  { %v2404_v34 = vpop.eup %2403 }
0x12d0   :  { %833 = vrot.lane.b32.xlu1 %v2404_v34, %s2543_s0 }
0x1342   :  { %v834_v35 = vpop.permute.xlu1 %833 }
0x1343   :  { %v836_v36 = vmul.f32 %v834_v35, %v816_v27  ;;  %v2855_v35 = vsub.s32 0, %v963_v18 }
0x1345   :  { %v838_v37 = vrot.slane %v836_v36, 6 }
0x1347   :  { %839 = vrot.lane.b32.xlu0 %v838_v37, %s2544_s2 }
0x13b9   :  { %v840_v38 = vpop.permute.xlu0 %839 }
0x13ba   :  { %2176 = vmatmul.mubr.msk.f32.vlgmr.msra.gmra.mrb[6].mxu1 %vm118_vm4, %v840_v38  ;;  %v81_v38 = vld [vmem:[#allocation8] sm:$0x1] }
0x13bb   :  { %2197 = vmatprep.mubr.msk.f32.mxu1 %vm2539_vm0, %v2540_v2 }
0x148d   :  { %v909_v39 = vpop.f32.mrb[6].mxu1 }
0x148e   :  { %v914_v40 = vrot.slane %v909_v39, 1  ;;  %v2177_v41 = vpop.f32.mrb[7].mxu1 }
0x1490   :  { %v916_v42 = vadd.f32 %v914_v40, %v2687_v17  ;;  %v2799_v17 = vld [vmem:[%s3060_s5] sm:$0xff]  ;;  %v965_v40 = vrot.slane %v81_v38, %v2855_v35 }
0x1491   :  { %v2315_v55 = vpack.c.bf16 %v2804_v53, %v2799_v17 }
0x1492   :  { %v917_v43 = vmul.f32 %v916_v42, %v2689_v19 }
0x1493   :  { %2316 = vmatpush3.bf16.msra.mxu0 %v2315_v55 }
0x1494   :  { %2405 = vtanh.f32 %v917_v43  ;;  %2317 = vmatprep.subr.bf16.mxu0 %v2538_v1 }
0x1497   :  { %2319 = vmatpush3.bf16.msra.mxu0 %v2318_v57 }
0x1498   :  { %2326 = vmatprep.subr.bf16.mxu0 %v2538_v1 }
0x149e   :  { %v2406_v44 = vpop.eup %2405 }
0x149f   :  { %v919_v45 = vmul.f32 %v2406_v44, %v2689_v19 }
0x14a1   :  { %v920_v46 = vadd.f32 %v919_v45, %v2693_v25 }
0x14a3   :  { %926 = vrot.lane.b32.xlu1 %v920_v46, %s2543_s0  ;;  %v924_v50 = vmul.f32 %v922_v49, %v920_v46 }
0x1515   :  { %v927_v47 = vpop.permute.xlu1 %926 }
0x1516   :  { %v929_v48 = vmul.f32 %v927_v47, %v920_v46 }
0x1518   :  { %931 = vrot.lane.b32.xlu0 %v929_v48, %s2544_s2 }
0x158a   :  { %v932_v51 = vpop.permute.xlu0 %931 }
0x158b   :  { %v934_v52 = vadd.f32 %v932_v51, %v924_v50 }
0x158d   :  { %2407 = vtanh.f32 %v934_v52  ;;  %v1068_v22 = vcombine.high %v934_v52, %v934_v52 }
0x158f   :  { %v1075_v23 = vrot.slane %v1068_v22, %v1074_v21 }
0x1591   :  { %v1076_v24 = vcombine.high %v1075_v23, %v1075_v23 }
0x1593   :  { %v1083_v26 = vrot.slane %v1076_v24, %v1074_v21 }
0x1595   :  { %v1084_v27 = vcombine.high %v1083_v26, %v1083_v26 }
0x1597   :  { %v2408_v58 = vpop.eup %2407 }
0x1598   :  { %937 = vrot.lane.b32.xlu1 %v2408_v58, %s2543_s0 }
0x160a   :  { %v938_v59 = vpop.permute.xlu1 %937 }
0x160b   :  { %v940_v60 = vmul.f32 %v938_v59, %v920_v46 }
0x160d   :  { %v987_v61 = vrot.slane %v940_v60, 7 }
0x160f   :  { %988 = vrot.lane.b32.xlu0 %v987_v61, %s2544_s2 }
0x1681   :  { %v989_v62 = vpop.permute.xlu0 %988 }
0x1682   :  { %2187 = vmatmul.mubr.msk.f32.vlgmr.msra.gmra.mrb[8].mxu0 %vm118_vm4, %v989_v62 }
0x1683   :  { %2208 = vmatprep.mubr.msk.f32.mxu0 %vm2539_vm0, %v2540_v2 }
0x1755   :  { %v1058_v7 = vpop.f32.mrb[8].mxu0 }
0x1756   :  { %v1062_v0 = vadd.f32 %v1058_v7, %v2830_v63  ;;  %v2188_v3 = vpop.f32.mrb[9].mxu0 }
0x1758   :  { %v1063_v4 = vmul.f32 %v1062_v0, %v2689_v19 }
0x175a   :  { %2409 = vtanh.f32 %v1063_v4 }
0x1764   :  { %v2410_v10 = vpop.eup %2409 }
0x1765   :  { %v1065_v5 = vmul.f32 %v2410_v10, %v2689_v19 }
0x1767   :  { %v1066_v6 = vadd.f32 %v1065_v5, %v2693_v25 }
0x1769   :  { %1088 = vrot.lane.b32.xlu1 %v1066_v6, %s2543_s0  ;;  %v1086_v28 = vmul.f32 %v1084_v27, %v1066_v6 }
0x17db   :  { %v1089_v8 = vpop.permute.xlu1 %1088 }
0x17dc   :  { %v1091_v9 = vmul.f32 %v1089_v8, %v1066_v6 }
0x17de   :  { %1093 = vrot.lane.b32.xlu0 %v1091_v9, %s2544_s2 }
0x17e2   :  { %943 = vperm.xlu0 %2375, %v83_v12  }
0x17e6   :  { %953 = vperm.xlu0 %2375, %v85_v13  }
0x1850   :  { %v1094_v29 = vpop.permute.xlu0 %1093 }
0x1851   :  { %v1096_v30 = vadd.f32 %v1094_v29, %v1086_v28 }
0x1853   :  { %2411 = vtanh.f32 %v1096_v30 }
0x185d   :  { %v2412_v31 = vpop.eup %2411 }
0x185e   :  { %1099 = vrot.lane.b32.xlu1 %v2412_v31, %s2543_s0 }
0x1861   :  { %v944_v39 = vpop.permute.xlu0 %943 }
0x1862   :  { %948 = vperm.xlu1 %2376, %v84_v32   ;;  %v967_v41 = vmul.f32 %v965_v40, %v944_v39 }
0x1864   :  { %v971_v45 = vadd.f32 %v967_v41, %v2799_v17 }
0x1865   :  { %v954_v42 = vpop.permute.xlu0 %953 }
0x1866   :  { %958 = vperm.xlu1 %2376, %v86_v11   ;;  %v969_v46 = vmul.f32 %v965_v40, %v954_v42 }
0x1868   :  { %v973_v51 = vadd.f32 %v969_v46, %v2809_v54 }
0x186a   :  { %977 = vperm.xlu1 %2376, %v2852_v33  }
0x18d0   :  { %v1100_v34 = vpop.permute.xlu1 %1099 }
0x18d1   :  { %v2857_v36 = vmul.f32 %v1100_v34, %v1066_v6 }
0x18d3   :  { %v1132_v37 = vrot.slane %v2857_v36, %v2855_v35 }
0x18d5   :  { %1133 = vrot.lane.b32.xlu0 %v1132_v37, %s2544_s2 }
0x18e1   :  { %v949_v43 = vpop.permute.xlu1 %948 }
0x18e2   :  { %v968_v44 = vmul.f32 %v965_v40, %v949_v43 }
0x18e4   :  { %v972_v47 = vadd.f32 %v968_v44, %v2804_v53 }
0x18e5   :  { %v959_v48 = vpop.permute.xlu1 %958 }
0x18e6   :  { %v2865_v49 = vpack.c.bf16 %v972_v47, %v971_v45  ;;  %v970_v50 = vmul.f32 %v965_v40, %v959_v48 }
0x18e8   :  { %v974_v52 = vadd.f32 %v970_v50, %v2816_v56  ;;  %2322 = vmatpush3.bf16.msra.mxu1 %v2865_v49  ;;  %2328 = vmatpush3.bf16.msra.mxu0 %v2865_v49 }
0x18e9   :  { %2323 = vmatprep.subr.bf16.mxu1 %v2538_v1  ;;  %2329 = vmatprep.subr.bf16.mxu0 %v2538_v1  ;;  %v978_v54 = vpop.permute.xlu1 %977 }
0x18ea   :  { %v2873_v17 = vpack.c.bf16 %v974_v52, %v973_v51  ;;  %v983_v55 = vrot.slane %v978_v54, %v2855_v35 }
0x18ec   :  { %2325 = vmatpush3.bf16.msra.mxu1 %v2873_v17  ;;  %2331 = vmatpush3.bf16.msra.mxu0 %v2873_v17  ;;  %v984_v56 = vmul.f32 %v983_v55, %v81_v38 }
0x18ed   :  { %2332 = vmatprep.subr.bf16.mxu1 %v2538_v1  ;;  %2338 = vmatprep.subr.bf16.mxu0 %v2538_v1 }
0x18ee   :  { %v2888_v57 = vadd.f32 %v984_v56, %v2830_v63 }
0x1947   :  { %v1134_v53 = vpop.permute.xlu0 %1133 }
0x1948   :  { %2198 = vmatmul.mubr.msk.f32.vlgmr.msra.gmra.mrb[8].mxu1 %vm118_vm4, %v1134_v53 }
0x1949   :  { %2334 = vmatpush3.bf16.msra.mxu1 %v2865_v49  ;;  %2219 = vmatprep.mubr.msk.f32.mxu1 %vm2539_vm0, %v2540_v2 }
0x194a   :  { %2335 = vmatprep.subr.bf16.mxu1 %v2538_v1 }
0x194d   :  { %2337 = vmatpush3.bf16.msra.mxu1 %v2873_v17 }
0x194e   :  { %2344 = vmatprep.subr.bf16.mxu1 %v2538_v1 }
0x1a1b   :  { %v1203_v58 = vpop.f32.mrb[8].mxu1 }
0x1a1c   :  { %v1207_v59 = vadd.f32 %v1203_v58, %v2888_v57  ;;  %v2199_v60 = vpop.f32.mrb[9].mxu1 }
0x1a1e   :  { %v1208_v61 = vmul.f32 %v1207_v59, %v2689_v19 }
0x1a20   :  { %2413 = vtanh.f32 %v1208_v61 }
0x1a2a   :  { %v2414_v62 = vpop.eup %2413 }
0x1a2b   :  { %v1210_v7 = vmul.f32 %v2414_v62, %v2689_v19 }
0x1a2d   :  { %v1211_v0 = vadd.f32 %v1210_v7, %v2693_v25 }
0x1a2f   :  { %1214 = vrot.lane.b32.xlu0 %v1211_v0, %s2543_s0  ;;  %v1212_v63 = vmul.f32 %v1211_v0, %v1096_v30 }
0x1aa1   :  { %v1215_v3 = vpop.permute.xlu0 %1214 }
0x1aa2   :  { %v1217_v4 = vmul.f32 %v1215_v3, %v1211_v0 }
0x1aa4   :  { %1219 = vrot.lane.b32.xlu1 %v1217_v4, %s2544_s2 }
0x1b16   :  { %v1220_v10 = vpop.permute.xlu1 %1219 }
0x1b17   :  { %v1222_v5 = vadd.f32 %v1220_v10, %v1212_v63 }
0x1b19   :  { %2415 = vtanh.f32 %v1222_v5 }
0x1b23   :  { %v2416_v6 = vpop.eup %2415 }
0x1b24   :  { %1225 = vrot.lane.b32.xlu0 %v2416_v6, %s2543_s0 }
0x1b96   :  { %v1226_v8 = vpop.permute.xlu0 %1225 }
0x1b97   :  { %v2897_v9 = vmul.f32 %v1226_v8, %v1211_v0 }
0x1b99   :  { %v1253_v12 = vrot.slane %v2897_v9, %v2855_v35 }
0x1b9b   :  { %1254 = vrot.lane.b32.xlu1 %v1253_v12, %s2544_s2 }
0x1c0d   :  { %v1255_v13 = vpop.permute.xlu1 %1254 }
0x1c0e   :  { %2209 = vmatmul.mubr.msk.f32.vlgmr.msra.gmra.mrb[10].mxu0 %vm118_vm4, %v1255_v13 }
0x1c0f   :  { %2340 = vmatpush3.bf16.msra.mxu0 %v2865_v49  ;;  %2230 = vmatprep.mubr.msk.f32.mxu0 %vm2539_vm0, %v2540_v2 }
0x1c10   :  { %2341 = vmatprep.subr.bf16.mxu0 %v2538_v1 }
0x1c13   :  { %2343 = vmatpush3.bf16.msra.mxu0 %v2873_v17 }
0x1c14   :  { %2350 = vmatprep.subr.bf16.mxu0 %v2538_v1 }
0x1ce1   :  { %v1324_v15 = vpop.f32.mrb[10].mxu0 }
0x1ce2   :  { %v1328_v16 = vadd.f32 %v1324_v15, %v2888_v57  ;;  %v2210_v18 = vpop.f32.mrb[11].mxu0 }
0x1ce4   :  { %v1329_v20 = vmul.f32 %v1328_v16, %v2689_v19 }
0x1ce6   :  { %2417 = vtanh.f32 %v1329_v20 }
0x1cf0   :  { %v2418_v21 = vpop.eup %2417 }
0x1cf1   :  { %v1331_v22 = vmul.f32 %v2418_v21, %v2689_v19 }
0x1cf3   :  { %v1332_v23 = vadd.f32 %v1331_v22, %v2693_v25 }
0x1cf5   :  { %1335 = vrot.lane.b32.xlu0 %v1332_v23, %s2543_s0  ;;  %v1333_v27 = vmul.f32 %v1332_v23, %v1222_v5 }
0x1d67   :  { %v1336_v24 = vpop.permute.xlu0 %1335 }
0x1d68   :  { %v1338_v26 = vmul.f32 %v1336_v24, %v1332_v23 }
0x1d6a   :  { %1340 = vrot.lane.b32.xlu1 %v1338_v26, %s2544_s2 }
0x1ddc   :  { %v1341_v28 = vpop.permute.xlu1 %1340 }
0x1ddd   :  { %v1343_v29 = vadd.f32 %v1341_v28, %v1333_v27 }
0x1ddf   :  { %2419 = vtanh.f32 %v1343_v29 }
0x1de9   :  { %v2420_v30 = vpop.eup %2419 }
0x1dea   :  { %1346 = vrot.lane.b32.xlu0 %v2420_v30, %s2543_s0 }
0x1e5c   :  { %v1347_v31 = vpop.permute.xlu0 %1346 }
0x1e5d   :  { %v2916_v32 = vmul.f32 %v1347_v31, %v1332_v23 }
0x1e5f   :  { %v1374_v11 = vrot.slane %v2916_v32, %v2855_v35 }
0x1e61   :  { %1375 = vrot.lane.b32.xlu1 %v1374_v11, %s2544_s2 }
0x1ed3   :  { %v1376_v34 = vpop.permute.xlu1 %1375 }
0x1ed4   :  { %2220 = vmatmul.mubr.msk.f32.vlgmr.msra.gmra.mrb[10].mxu1 %vm118_vm4, %v1376_v34 }
0x1ed5   :  { %2346 = vmatpush3.bf16.msra.mxu1 %v2865_v49  ;;  %2241 = vmatprep.mubr.msk.f32.mxu1 %vm2539_vm0, %v2540_v2 }
0x1ed6   :  { %2347 = vmatprep.subr.bf16.mxu1 %v2538_v1 }
0x1ed9   :  { %2349 = vmatpush3.bf16.msra.mxu1 %v2873_v17 }
0x1eda   :  { %2356 = vmatprep.subr.bf16.mxu1 %v2538_v1 }
0x1fa7   :  { %v1445_v37 = vpop.f32.mrb[10].mxu1 }
0x1fa8   :  { %v1449_v38 = vadd.f32 %v1445_v37, %v2888_v57  ;;  %v2221_v39 = vpop.f32.mrb[11].mxu1 }
0x1faa   :  { %v1450_v40 = vmul.f32 %v1449_v38, %v2689_v19 }
0x1fac   :  { %2421 = vtanh.f32 %v1450_v40 }
0x1fb6   :  { %v2422_v41 = vpop.eup %2421 }
0x1fb7   :  { %v1452_v42 = vmul.f32 %v2422_v41, %v2689_v19 }
0x1fb9   :  { %v1453_v43 = vadd.f32 %v1452_v42, %v2693_v25 }
0x1fbb   :  { %1456 = vrot.lane.b32.xlu0 %v1453_v43, %s2543_s0  ;;  %v1454_v46 = vmul.f32 %v1453_v43, %v1343_v29 }
0x202d   :  { %v1457_v44 = vpop.permute.xlu0 %1456 }
0x202e   :  { %v1459_v45 = vmul.f32 %v1457_v44, %v1453_v43 }
0x2030   :  { %1461 = vrot.lane.b32.xlu1 %v1459_v45, %s2544_s2 }
0x20a2   :  { %v1462_v47 = vpop.permute.xlu1 %1461 }
0x20a3   :  { %v1464_v48 = vadd.f32 %v1462_v47, %v1454_v46 }
0x20a5   :  { %2423 = vtanh.f32 %v1464_v48 }
0x20af   :  { %v2424_v50 = vpop.eup %2423 }
0x20b0   :  { %1467 = vrot.lane.b32.xlu0 %v2424_v50, %s2543_s0 }
0x2122   :  { %v1468_v51 = vpop.permute.xlu0 %1467 }
0x2123   :  { %v2935_v52 = vmul.f32 %v1468_v51, %v1453_v43 }
0x2125   :  { %v1495_v53 = vrot.slane %v2935_v52, %v2855_v35 }
0x2127   :  { %1496 = vrot.lane.b32.xlu1 %v1495_v53, %s2544_s2 }
0x2199   :  { %v1497_v54 = vpop.permute.xlu1 %1496 }
0x219a   :  { %2231 = vmatmul.mubr.msk.f32.vlgmr.msra.gmra.mrb[12].mxu0 %vm118_vm4, %v1497_v54 }
0x219b   :  { %2352 = vmatpush3.bf16.msra.mxu0 %v2865_v49  ;;  %2252 = vmatprep.mubr.msk.f32.mxu0 %vm2539_vm0, %v2540_v2 }
0x219c   :  { %2353 = vmatprep.subr.bf16.mxu0 %v2538_v1 }
0x219f   :  { %2355 = vmatpush3.bf16.msra.mxu0 %v2873_v17 }
0x226d   :  { %v1566_v55 = vpop.f32.mrb[12].mxu0 }
0x226e   :  { %v1570_v56 = vadd.f32 %v1566_v55, %v2888_v57  ;;  %v2232_v58 = vpop.f32.mrb[13].mxu0 }
0x2270   :  { %v1571_v59 = vmul.f32 %v1570_v56, %v2689_v19 }
0x2272   :  { %2425 = vtanh.f32 %v1571_v59 }
0x227c   :  { %v2426_v60 = vpop.eup %2425 }
0x227d   :  { %v1573_v61 = vmul.f32 %v2426_v60, %v2689_v19  ;;  %v87_v60 = vld [vmem:[%s3063_s8] sm:$0x1]  ;;  %s2547_s8 = smov [#allocation9]  }
0x227e   :  { %s1983_s13 = sshll.u32 %s2547_s8, 4  ;;  %s1984_s13 = int_to_ptr.vmem [resolvable:$true] %s1983_s13 }
0x227f   :  { %v1574_v62 = vadd.f32 %v1573_v61, %v2693_v25  ;;  %s2507_s14 = scalar_lea.vmem %s1984_s13, 16  ;;  %s2511_s15 = scalar_lea.vmem %s1984_s13, 32 }
0x2280   :  { %p2508_p10 = scmp.ne.s32.totalorder %s1984_s13, %s2507_s14  ;;  %p2512_p11 = scmp.lt.s32.totalorder %s1984_s13, %s1984_s13 }
0x2281   :  { %1577 = vrot.lane.b32.xlu0 %v1574_v62, %s2543_s0  ;;  %v1575_v3 = vmul.f32 %v1574_v62, %v1464_v48  ;;  %p2513_p12 = scmp.lt.s32.totalorder %s2511_s15, %s2507_s14 }
0x2283   :  { %p2514_p13 = por %p2513_p12, %p2512_p11 }
0x2285   :  { %p2515_p0 = pnand %p2514_p13, %p2508_p10 }
0x22f3   :  { %v1578_v7 = vpop.permute.xlu0 %1577 }
0x22f4   :  { %v1580_v0 = vmul.f32 %v1578_v7, %v1574_v62 }
0x22f6   :  { %1582 = vrot.lane.b32.xlu1 %v1580_v0, %s2544_s2 }
0x2368   :  { %v1583_v4 = vpop.permute.xlu1 %1582 }
0x2369   :  { %v1585_v63 = vadd.f32 %v1583_v4, %v1575_v3 }
0x236b   :  { %2427 = vtanh.f32 %v1585_v63 }
0x2375   :  { %v2428_v10 = vpop.eup %2427 }
0x2376   :  { %1588 = vrot.lane.b32.xlu0 %v2428_v10, %s2543_s0 }
0x23e8   :  { %v1589_v5 = vpop.permute.xlu0 %1588 }
0x23e9   :  { %v2953_v6 = vmul.f32 %v1589_v5, %v1574_v62 }
0x23eb   :  { %v1616_v8 = vrot.slane %v2953_v6, %v2855_v35 }
0x23ed   :  { %1617 = vrot.lane.b32.xlu1 %v1616_v8, %s2544_s2 }
0x245f   :  { %v1618_v12 = vpop.permute.xlu1 %1617 }
0x2460   :  { %2242 = vmatmul.mubr.msk.f32.vlgmr.msra.gmra.mrb[12].mxu1 %vm118_vm4, %v1618_v12 }
0x2461   :  { %2358 = vmatpush3.bf16.msra.mxu1 %v2865_v49  ;;  %2263 = vmatprep.mubr.msk.f32.mxu1 %vm2539_vm0, %v2540_v2 }
0x2462   :  { %2359 = vmatprep.subr.bf16.mxu1 %v2538_v1 }
0x2465   :  { %2361 = vmatpush3.bf16.msra.mxu1 %v2873_v17 }
0x2533   :  { %v1687_v13 = vpop.f32.mrb[12].mxu1 }
0x2534   :  { %v1691_v15 = vadd.f32 %v1687_v13, %v2888_v57  ;;  %v2243_v16 = vpop.f32.mrb[13].mxu1 }
0x2536   :  { %v1692_v18 = vmul.f32 %v1691_v15, %v2689_v19 }
0x2538   :  { %2429 = vtanh.f32 %v1692_v18 }
0x2542   :  { %v2430_v20 = vpop.eup %2429 }
0x2543   :  { %v1694_v21 = vmul.f32 %v2430_v20, %v2689_v19 }
0x2545   :  { %v1695_v22 = vadd.f32 %v1694_v21, %v2693_v25 }
0x2547   :  { %1698 = vrot.lane.b32.xlu0 %v1695_v22, %s2543_s0  ;;  %v1696_v1 = vmul.f32 %v1695_v22, %v1585_v63 }
0x25b9   :  { %v1699_v49 = vpop.permute.xlu0 %1698 }
0x25ba   :  { %v1701_v2 = vmul.f32 %v1699_v49, %v1695_v22 }
0x25bc   :  { %1703 = vrot.lane.b32.xlu1 %v1701_v2, %s2544_s2 }
0x262e   :  { %v1704_v17 = vpop.permute.xlu1 %1703 }
0x262f   :  { %v1706_v23 = vadd.f32 %v1704_v17, %v1696_v1 }
0x2631   :  { %2431 = vtanh.f32 %v1706_v23 }
0x263b   :  { %v2432_v24 = vpop.eup %2431 }
0x263c   :  { %1709 = vrot.lane.b32.xlu0 %v2432_v24, %s2543_s0 }
0x26ae   :  { %v1710_v26 = vpop.permute.xlu0 %1709 }
0x26af   :  { %v2971_v27 = vmul.f32 %v1710_v26, %v1695_v22 }
0x26b1   :  { %v1737_v28 = vrot.slane %v2971_v27, %v2855_v35 }
0x26b3   :  { %1738 = vrot.lane.b32.xlu1 %v1737_v28, %s2544_s2 }
0x2725   :  { %v1739_v29 = vpop.permute.xlu1 %1738 }
0x2726   :  { %2253 = vmatmul.mubr.msk.f32.vlgmr.msra.gmra.mrb[14].mxu0 %vm118_vm4, %v1739_v29 }
0x27f9   :  { %v1808_v30 = vpop.f32.mrb[14].mxu0 }
0x27fa   :  { %v1812_v31 = vadd.f32 %v1808_v30, %v2888_v57  ;;  %v2254_v11 = vpop.f32.mrb[15].mxu0 }
0x27fc   :  { %v1813_v34 = vmul.f32 %v1812_v31, %v2689_v19 }
0x27fe   :  { %2433 = vtanh.f32 %v1813_v34 }
0x2808   :  { %v2434_v37 = vpop.eup %2433 }
0x2809   :  { %v1815_v38 = vmul.f32 %v2434_v37, %v2689_v19 }
0x280b   :  { %v1816_v39 = vadd.f32 %v1815_v38, %v2693_v25 }
0x280d   :  { %1819 = vrot.lane.b32.xlu0 %v1816_v39, %s2543_s0  ;;  %v1817_v42 = vmul.f32 %v1816_v39, %v1706_v23 }
0x287f   :  { %v1820_v40 = vpop.permute.xlu0 %1819 }
0x2880   :  { %v1822_v41 = vmul.f32 %v1820_v40, %v1816_v39 }
0x2882   :  { %1824 = vrot.lane.b32.xlu1 %v1822_v41, %s2544_s2 }
0x28f4   :  { %v1825_v43 = vpop.permute.xlu1 %1824 }
0x28f5   :  { %v1827_v44 = vadd.f32 %v1825_v43, %v1817_v42 }
0x28f7   :  { %2435 = vtanh.f32 %v1827_v44 }
0x2901   :  { %v2436_v45 = vpop.eup %2435 }
0x2902   :  { %1830 = vrot.lane.b32.xlu0 %v2436_v45, %s2543_s0 }
0x2974   :  { %v1831_v46 = vpop.permute.xlu0 %1830 }
0x2975   :  { %v1833_v47 = vmul.f32 %v1831_v46, %v1816_v39 }
0x2977   :  { %v1858_v48 = vrot.slane %v1833_v47, %v2855_v35 }
0x2979   :  { %1859 = vrot.lane.b32.xlu1 %v1858_v48, %s2544_s2 }
0x29eb   :  { %v1860_v50 = vpop.permute.xlu1 %1859 }
0x29ec   :  { %2264 = vmatmul.mubr.msk.f32.vlgmr.msra.gmra.mrb[14].mxu1 %vm118_vm4, %v1860_v50 }
0x2abf   :  { %v1929_v51 = vpop.f32.mrb[14].mxu1 }
0x2ac0   :  { %v1933_v53 = vadd.f32 %v1929_v51, %v2888_v57  ;;  %v2265_v54 = vpop.f32.mrb[15].mxu1 }
0x2ac2   :  { %v1934_v55 = vmul.f32 %v1933_v53, %v2689_v19 }
0x2ac4   :  { %2437 = vtanh.f32 %v1934_v55 }
0x2ace   :  { %v2438_v56 = vpop.eup %2437 }
0x2acf   :  { %v1936_v58 = vmul.f32 %v2438_v56, %v2689_v19 }
0x2ad1   :  { %v1937_v59 = vadd.f32 %v1936_v58, %v2693_v25 }
0x2ad3   :  { %1940 = vrot.lane.b32.xlu0 %v1937_v59, %s2543_s0 }
0x2ad7   :  { %1104 = vrot.lane.b32.xlu0 %v87_v60, %s2546_s12 }
0x2b45   :  { %v1941_v61 = vpop.permute.xlu0 %1940 }
0x2b46   :  { %v1943_v62 = vmul.f32 %v1941_v61, %v1937_v59 }
0x2b48   :  { %1945 = vrot.lane.b32.xlu1 %v1943_v62, %s2544_s2 }
0x2b49   :  { %v1105_v57 = vpop.permute.xlu0 %1104 }
0x2b4a   :  { %v1107_v7 = vmul.f32 %v1105_v57, %v2857_v36  ;;  %v1229_v19 = vmul.f32 %v2897_v9, %v1105_v57  ;;  %v1938_v36 = vmul.f32 %v1937_v59, %v1827_v44  ;;  %v1471_v9 = vmul.f32 %v2935_v52, %v1105_v57 }
0x2b4b   :  { %v1350_v13 = vmul.f32 %v2916_v32, %v1105_v57  ;;  %v1713_v32 = vmul.f32 %v2971_v27, %v1105_v57  ;;  %v1592_v17 = vmul.f32 %v2953_v6, %v1105_v57  ;;  %v1834_v26 = vmul.f32 %v1833_v47, %v1105_v57 }
0x2b4c   :  { %v1112_v0 = vrot.slane %v1107_v7, %v2855_v35  ;;  %v1234_v25 = vrot.slane %v1229_v19, %v2855_v35  ;;  %v1476_v12 = vrot.slane %v1471_v9, %v2855_v35 }
0x2b4d   :  { %v1355_v16 = vrot.slane %v1350_v13, %v2855_v35  ;;  %v1718_v1 = vrot.slane %v1713_v32, %v2855_v35  ;;  %v1597_v24 = vrot.slane %v1592_v17, %v2855_v35  ;;  %v1839_v29 = vrot.slane %v1834_v26, %v2855_v35 }
0x2b4e   :  { %1113 = vrot.lane.b32.xlu1 %v1112_v0, %s2544_s2 }
0x2b52   :  { %1235 = vrot.lane.b32.xlu1 %v1234_v25, %s2544_s2 }
0x2bba   :  { %v1946_v3 = vpop.permute.xlu1 %1945 }
0x2bbb   :  { %v1948_v8 = vadd.f32 %v1946_v3, %v1938_v36 }
0x2bbd   :  { %2439 = vtanh.f32 %v1948_v8 }
0x2bc0   :  { %v1114_v4 = vpop.permute.xlu1 %1113 }
0x2bc1   :  { %v1117_v63 = vsel %vm1116_vm5, %v1114_v4, 0.0 }
0x2bc2   :  { %1118 = vadd.xlane.f32.xlu0 %v1117_v63 }
0x2bc4   :  { %v1236_v10 = vpop.permute.xlu1 %1235 }
0x2bc5   :  { %v1238_v5 = vsel %vm1116_vm5, %v1236_v10, 0.0 }
0x2bc6   :  { %1239 = vadd.xlane.f32.xlu1 %v1238_v5 }
0x2bc7   :  { %v2440_v15 = vpop.eup %2439 }
0x2bd7   :  { %1477 = vrot.lane.b32.xlu1 %v1476_v12, %s2544_s2 }
0x2bd8   :  { %1951 = vrot.lane.b32.xlu0 %v2440_v15, %s2543_s0 }
0x2bdc   :  { %1356 = vrot.lane.b32.xlu0 %v1355_v16, %s2544_s2 }
0x2c4f   :  { %v1119_v18 = vpop.xlane.xlu0 %1118 }
0x2c53   :  { %v1240_v20 = vpop.xlane.xlu1 %1239  ;;  %v1952_v21 = vpop.permute.xlu0 %1951 }
0x2c54   :  { %v1954_v23 = vmul.f32 %v1952_v21, %v1937_v59  ;;  %v1241_v42 = vadd.f32 %v1240_v20, %v2852_v33 }
0x2c56   :  { %v1955_v28 = vmul.f32 %v1954_v23, %v1105_v57 }
0x2c57   :  { %v1478_v22 = vpop.permute.xlu1 %1477  ;;  %v1357_v49 = vpop.permute.xlu0 %1356 }
0x2c58   :  { %v1480_v52 = vsel %vm1116_vm5, %v1478_v22, 0.0  ;;  %v1359_v2 = vsel %vm1116_vm5, %v1357_v49, 0.0  ;;  %v1960_v30 = vrot.slane %v1955_v28, %v2855_v35  ;;  %v1120_v35 = vadd.f32 %v1119_v18, %v2852_v33 }
0x2c59   :  { %1481 = vadd.xlane.f32.xlu1 %v1480_v52  ;;  %1360 = vadd.xlane.f32.xlu0 %v1359_v2 }
0x2c6a   :  { %1719 = vrot.lane.b32.xlu1 %v1718_v1, %s2544_s2 }
0x2c6f   :  { %1598 = vrot.lane.b32.xlu0 %v1597_v24, %s2544_s2 }
0x2c73   :  { %1840 = vrot.lane.b32.xlu0 %v1839_v29, %s2544_s2 }
0x2c77   :  { %1961 = vrot.lane.b32.xlu0 %v1960_v30, %s2544_s2 }
0x2ce6   :  { %v1482_v27 = vpop.xlane.xlu1 %1481  ;;  %v1361_v31 = vpop.xlane.xlu0 %1360 }
0x2ce7   :  { %v1362_v43 = vadd.f32 %v1361_v31, %v2852_v33  ;;  %v1483_v44 = vadd.f32 %v1482_v27, %v2852_v33 }
0x2cea   :  { %v1720_v6 = vpop.permute.xlu1 %1719  ;;  %v1599_v11 = vpop.permute.xlu0 %1598 }
0x2ceb   :  { %v1722_v34 = vsel %vm1116_vm5, %v1720_v6, 0.0  ;;  %v1601_v37 = vsel %vm1116_vm5, %v1599_v11, 0.0 }
0x2cec   :  { %1723 = vadd.xlane.f32.xlu1 %v1722_v34  ;;  %1602 = vadd.xlane.f32.xlu0 %v1601_v37 }
0x2cee   :  { %v1841_v38 = vpop.permute.xlu0 %1840 }
0x2cef   :  { %v1843_v39 = vsel %vm1116_vm5, %v1841_v38, 0.0 }
0x2cf0   :  { %1844 = vadd.xlane.f32.xlu0 %v1843_v39 }
0x2cf2   :  { %v1962_v40 = vpop.permute.xlu0 %1961 }
0x2cf3   :  { %v1964_v41 = vsel %vm1116_vm5, %v1962_v40, 0.0 }
0x2cf4   :  { %1965 = vadd.xlane.f32.xlu0 %v1964_v41 }
0x2cfd   :  { %1124 = vperm.xlu1 %2376, %v1120_v35  }
0x2d01   :  { %1245 = vperm.xlu1 %2376, %v1241_v42  }
0x2d05   :  { %1366 = vperm.xlu1 %2376, %v1362_v43  }
0x2d0a   :  { %1487 = vperm.xlu0 %2375, %v1483_v44  }
0x2d79   :  { %v1724_v45 = vpop.xlane.xlu1 %1723  ;;  %v1603_v46 = vpop.xlane.xlu0 %1602 }
0x2d7a   :  { %v1725_v47 = vadd.f32 %v1724_v45, %v2852_v33  ;;  %v1604_v48 = vadd.f32 %v1603_v46, %v2852_v33 }
0x2d7c   :  { %1729 = vperm.xlu0 %2375, %v1725_v47   ;;  %1608 = vperm.xlu1 %2376, %v1604_v48  }
0x2d7d   :  { %v1845_v50 = vpop.xlane.xlu0 %1844  ;;  %v1125_v55 = vpop.permute.xlu1 %1124 }
0x2d7e   :  { %v1846_v51 = vadd.f32 %v1845_v50, %v2852_v33  ;;  %v1127_v59 = vsel %vm1121_vm6, %v1125_v55, 0.0 }
0x2d80   :  { %1850 = vperm.xlu1 %2376, %v1846_v51  }
0x2d81   :  { %v1966_v53 = vpop.xlane.xlu0 %1965  ;;  %v1246_v56 = vpop.permute.xlu1 %1245 }
0x2d82   :  { %v1967_v54 = vadd.f32 %v1966_v53, %v2852_v33  ;;  %v1248_v62 = vsel %vm1242_vm7, %v1246_v56, %v1127_v59 }
0x2d84   :  { %1971 = vperm.xlu1 %2376, %v1967_v54  }
0x2d85   :  { %v1367_v58 = vpop.permute.xlu1 %1366 }
0x2d86   :  { %v1369_v57 = vsel %vm1363_vm8, %v1367_v58, %v1248_v62 }
0x2d89   :  { %v1488_v60 = vpop.permute.xlu0 %1487 }
0x2d8a   :  { %v1490_v33 = vsel %vm1484_vm9, %v1488_v60, %v1369_v57 }
0x2dfb   :  { %v1609_v61 = vpop.permute.xlu1 %1608  ;;  %v1730_v0 = vpop.permute.xlu0 %1729 }
0x2dfc   :  { %v1611_v7 = vsel %vm1605_vm10, %v1609_v61, %v1490_v33 }
0x2dfd   :  { %v1732_v25 = vsel %vm1726_vm11, %v1730_v0, %v1611_v7 }
0x2dff   :  { %v1851_v19 = vpop.permute.xlu1 %1850 }
0x2e00   :  { %v1853_v3 = vsel %vm1847_vm12, %v1851_v19, %v1732_v25 }
0x2e03   :  { %v1972_v4 = vpop.permute.xlu1 %1971 }
0x2e04   :  { %v1974_v63 = vsel %vm1968_vm13, %v1972_v4, %v1853_v3 }
0x2e05   :  { %1976 = vst.msk [vmem:[#allocation9] sm:$0x1] %vm1975_vm14, %v1974_v63 }
0x2e06   :  { %2518 = shalt.err (!%p2515_p0)
}
0x2e07   :  { %s2519_s3 = scalar_lea.hbm %s3065_s10, 16 }
0x2e08   :  { %p2520_p1 = scmp.ne.s32.totalorder %s3065_s10, %s2519_s3  ;;  %p2523_p2 = scmp.lt.u32.totalorder %s2519_s3, %s3065_s10 }
0x2e0a   :  { %p2525_p3 = pnand %p2523_p2, %p2520_p1 }
0x2e0c   :  { %2528 = shalt.err (!%p2525_p3)
}
0x2e0d   :  { %1986 = dma.vmem_to_hbm [thread:$0]  %s1984_s13, 16, %s3065_s10, [#allocation5]  }
0x2e0e   :  { %2533 = dma.done.wait [#allocation5], 16  }
0x2e0f   :  { %2534 = vsyncadd [#allocation5], 4294967280 }
0x2e10   :  { %1990 = vsyncpa [#allocation4], 1 }
0x2e11   :  { %1991 = vsyncpa [#allocation7], 1 }
0x2e12   :  { %1992 = vsyncpa [#allocation5], 1 }

</bundles_post_ra>
